<compile_context>
chip_gen: v7x
topology: tpu7x:2x2x1
jax: 0.10.0
libtpu: 0.0.40
codegen_flags: <defaults>
</compile_context>

<pallas_src>
import math
import functools

import jax
import jax.numpy as jnp
from jax.experimental import pallas as pl
from jax.experimental.pallas import tpu as pltpu


# ----------------------------------------------------------------------------
# Helpers
# ----------------------------------------------------------------------------

def _pick_tile(dim, candidates=(256, 128)):
    """Largest candidate tile that evenly divides `dim`, else the full dim.

    256-aligned tiles feed the v6e/v7x 2x256 MXU; small toy dims fall back to the
    full extent (which always satisfies the (8, 128) BlockSpec rule).
    """
    # TODO(synk): pad ragged (non-divisible) dims instead of falling back to the
    # full dimension for very large, non-aligned shapes.
    for c in candidates:
        if dim >= c and dim % c == 0:
            return c
    return dim


# ----------------------------------------------------------------------------
# Tiled linear:  y = x @ W + b   (f32 accumulation in VMEM scratch)
# ----------------------------------------------------------------------------

def _linear_kernel(x_ref, w_ref, b_ref, o_ref, acc_ref):
    k = pl.program_id(2)

    @pl.when(k == 0)
    def _init():
        acc_ref[...] = jnp.zeros_like(acc_ref)

    acc_ref[...] += jnp.dot(x_ref[...], w_ref[...],
                            preferred_element_type=jnp.float32)

    @pl.when(k == pl.num_programs(2) - 1)
    def _finalize():
        o_ref[...] = (acc_ref[...] + b_ref[...].astype(jnp.float32)
                      ).astype(o_ref.dtype)


def pallas_linear(x, w, b):
    """x: (M, K), w: (K, N), b: (N,) -> (M, N), accumulated in f32."""
    M, K = x.shape
    K2, N = w.shape
    assert K == K2
    tm = _pick_tile(M)
    tn = _pick_tile(N)
    tk = _pick_tile(K)
    grid = (M // tm, N // tn, K // tk)
    return pl.pallas_call(
        _linear_kernel,
        out_shape=jax.ShapeDtypeStruct((M, N), x.dtype),
        grid=grid,
        in_specs=[
            pl.BlockSpec((tm, tk), lambda i, j, k: (i, k)),
            pl.BlockSpec((tk, tn), lambda i, j, k: (k, j)),
            pl.BlockSpec((1, tn), lambda i, j, k: (0, j)),
        ],
        out_specs=pl.BlockSpec((tm, tn), lambda i, j, k: (i, j)),
        scratch_shapes=[pltpu.VMEM((tm, tn), jnp.float32)],
        compiler_params=pltpu.CompilerParams(
            dimension_semantics=("parallel", "parallel", "arbitrary")),
    )(x, w, b.reshape(1, N))


# ----------------------------------------------------------------------------
# Flash-style causal attention over a packed (B, T, 3, H, D) qkv tensor
# ----------------------------------------------------------------------------

def _flash_attn_kernel(q_ref, k_ref, v_ref, o_ref, m_sc, l_sc, acc_sc,
                       *, scale, approx_recip):
    # q_ref: (tq, H, D), k_ref/v_ref: (tk, H, D), o_ref: (tq, H*D)
    qi = pl.program_id(1)
    ki = pl.program_id(2)
    tq, num_heads, _ = q_ref.shape
    tk = k_ref.shape[0]

    @pl.when(ki == 0)
    def _init():
        m_sc[...] = jnp.full_like(m_sc, -jnp.inf)
        l_sc[...] = jnp.zeros_like(l_sc)
        acc_sc[...] = jnp.zeros_like(acc_sc)

    # Skip fully-masked kv tiles (causal):  kv_tile > q_tile contributes nothing.
    @pl.when(ki <= qi)
    def _compute():
        q = q_ref[...]                      # (tq, H, D)
        k = k_ref[...]                      # (tk, H, D)
        v = v_ref[...]                      # (tk, H, D)

        # Causal mask in global coordinates; only bites on the diagonal tile.
        row = jax.lax.broadcasted_iota(jnp.int32, (tq, tk), 0) + qi * tq
        col = jax.lax.broadcasted_iota(jnp.int32, (tq, tk), 1) + ki * tk
        mask = col <= row

        dn = (((1,), (1,)), ((), ()))       # contract over D -- no K transpose
        for h in range(num_heads):          # static unroll over heads
            q_h = q[:, h, :]                # (tq, D)
            k_h = k[:, h, :]                # (tk, D)
            v_h = v[:, h, :]                # (tk, D)

            s = jax.lax.dot_general(
                q_h, k_h, dn, preferred_element_type=jnp.float32) * scale
            s = jnp.where(mask, s, -jnp.inf)

            m_prev = m_sc[h]                                       # (tq, 1)
            m_new = jnp.maximum(m_prev, jnp.max(s, axis=-1, keepdims=True))
            alpha = jnp.exp(m_prev - m_new)
            p = jnp.exp(s - m_new)                                 # (tq, tk) f32
            l_sc[h] = alpha * l_sc[h] + jnp.sum(p, axis=-1, keepdims=True)
            acc_sc[h] = alpha * acc_sc[h] + jnp.dot(
                p.astype(v_h.dtype), v_h, preferred_element_type=jnp.float32)
            m_sc[h] = m_new

    # Diagonal tile is the last tile that contributes -> normalize + store once.
    @pl.when(ki == qi)
    def _finalize():
        outs = []
        for h in range(num_heads):
            inv_l = pl.reciprocal(l_sc[h], approx=approx_recip)    # (tq, 1), EUP
            outs.append(acc_sc[h] * inv_l)                         # (tq, D)
        o_ref[...] = jnp.concatenate(outs, axis=-1).astype(o_ref.dtype)


def pallas_flash_attention(qkv, *, out_dtype):
    """qkv: (B, T, 3, H, D) -> (B, T, H*D) causal attention, no host transposes."""
    B, T, three, H, D = qkv.shape
    assert three == 3
    tq = _pick_tile(T)
    tk = tq                                  # diagonal-tile logic assumes tq == tk
    grid = (B, T // tq, T // tk)

    q_spec = pl.BlockSpec((None, tq, None, H, D), lambda b, qi, ki: (b, qi, 0, 0, 0))
    k_spec = pl.BlockSpec((None, tk, None, H, D), lambda b, qi, ki: (b, ki, 1, 0, 0))
    v_spec = pl.BlockSpec((None, tk, None, H, D), lambda b, qi, ki: (b, ki, 2, 0, 0))
    o_spec = pl.BlockSpec((None, tq, H * D), lambda b, qi, ki: (b, qi, 0))

    kernel = functools.partial(
        _flash_attn_kernel,
        scale=1.0 / math.sqrt(D),
        approx_recip=(jnp.dtype(out_dtype) == jnp.dtype(jnp.bfloat16)))

    return pl.pallas_call(
        kernel,
        out_shape=jax.ShapeDtypeStruct((B, T, H * D), out_dtype),
        grid=grid,
        in_specs=[q_spec, k_spec, v_spec],
        out_specs=o_spec,
        scratch_shapes=[
            pltpu.VMEM((H, tq, 1), jnp.float32),   # running max
            pltpu.VMEM((H, tq, 1), jnp.float32),   # running denominator
            pltpu.VMEM((H, tq, D), jnp.float32),   # output accumulator
        ],
        compiler_params=pltpu.CompilerParams(
            dimension_semantics=("parallel", "parallel", "arbitrary")),
    )(qkv, qkv, qkv)


# ----------------------------------------------------------------------------
# Full module forward
# ----------------------------------------------------------------------------

@functools.partial(jax.jit, static_argnames=("num_heads",))
def causal_self_attention(x, w_attn, b_attn, w_proj, b_proj, *, num_heads):
    """Forward pass equivalent to the PyTorch CausalSelfAttention module.

    Weights are stored transposed relative to PyTorch: (in_features, out_features),
    so y = x @ W + b matches nn.Linear's y = x @ W_pt.T + b.
    """
    B, T, C = x.shape
    D = C // num_heads

    # c_attn: tiled (B*T, C) @ (C, 3C) + b
    qkv = pallas_linear(x.reshape(B * T, C), w_attn, b_attn)        # (B*T, 3C)

    # Free, contiguous reshape -- no splits / transposes on the host.
    qkv = qkv.reshape(B, T, 3, num_heads, D)

    # Flash causal attention; result already in (B, T, C) layout.
    attn = pallas_flash_attention(qkv, out_dtype=x.dtype)           # (B, T, C)

    # c_proj
    out = pallas_linear(attn.reshape(B * T, C), w_proj, b_proj)     # (B*T, C)
    return out.reshape(B, T, C)


# ----------------------------------------------------------------------------
# Pure-JAX reference (for correctness check)
# ----------------------------------------------------------------------------

def reference(x, w_attn, b_attn, w_proj, b_proj, num_heads):
    B, T, C = x.shape
    D = C // num_heads
    qkv = x @ w_attn + b_attn
    q, k, v = jnp.split(qkv, 3, axis=-1)
    q = q.reshape(B, T, num_heads, D).transpose(0, 2, 1, 3)
    k = k.reshape(B, T, num_heads, D).transpose(0, 2, 1, 3)
    v = v.reshape(B, T, num_heads, D).transpose(0, 2, 1, 3)
    s = jnp.einsum("bhqd,bhkd->bhqk", q, k) / math.sqrt(D)
    mask = jnp.tril(jnp.ones((T, T), dtype=bool))
    s = jnp.where(mask, s, -jnp.inf)
    p = jax.nn.softmax(s, axis=-1)
    o = jnp.einsum("bhqk,bhkd->bhqd", p, v)
    o = o.transpose(0, 2, 1, 3).reshape(B, T, C)
    return o @ w_proj + b_proj


# ----------------------------------------------------------------------------
# Main
# ----------------------------------------------------------------------------

if __name__ == "__main__":
    # config: emb_dim=32, num_heads=4, block_size (== T here) = 8
    B, T, C, H = 2, 8, 32, 4

    key = jax.random.PRNGKey(0)
    kx, k1, k2, k3, k4 = jax.random.split(key, 5)

    x = jax.random.normal(kx, (B, T, C), dtype=jnp.float32)

    # nn.Linear-style deterministic init, weights stored (in_features, out_features).
    bound = 1.0 / math.sqrt(C)
    w_attn = jax.random.uniform(k1, (C, 3 * C), jnp.float32, -bound, bound)
    b_attn = jax.random.uniform(k2, (3 * C,), jnp.float32, -bound, bound)
    w_proj = jax.random.uniform(k3, (C, C), jnp.float32, -bound, bound)
    b_proj = jax.random.uniform(k4, (C,), jnp.float32, -bound, bound)

    # ---- f32 run (exact normalization), strict check ----
    out = causal_self_attention(x, w_attn, b_attn, w_proj, b_proj, num_heads=H)
    out = jax.block_until_ready(out)
    ref = reference(x, w_attn, b_attn, w_proj, b_proj, H)
    assert out.shape == (B, T, C)
    assert jnp.allclose(out, ref, atol=1e-4, rtol=1e-4), "f32 mismatch vs reference"

    # ---- bf16 run (f32 accumulation / softmax stats inside kernels), loose check ----
    bf = lambda a: a.astype(jnp.bfloat16)
    out_bf = causal_self_attention(bf(x), bf(w_attn), bf(b_attn),
                                   bf(w_proj), bf(b_proj), num_heads=H)
    out_bf = jax.block_until_ready(out_bf)
    ref_bf = reference(bf(x).astype(jnp.float32), bf(w_attn).astype(jnp.float32),
                       bf(b_attn).astype(jnp.float32), bf(w_proj).astype(jnp.float32),
                       bf(b_proj).astype(jnp.float32), H)
    assert out_bf.dtype == jnp.bfloat16
    assert jnp.allclose(out_bf.astype(jnp.float32), ref_bf, atol=5e-2, rtol=5e-2), \
        "bf16 mismatch vs reference"

    print("KERNEL_OK")
</pallas_src>

<mosaic_0001>
module attributes {stable_mosaic.version = 11 : i64} {
  func.func @_linear_kernel(%arg0: i32, %arg1: i32, %arg2: i32, %arg3: memref<16x32xf32, #tpu.memory_space<vmem>>, %arg4: memref<32x96xf32, #tpu.memory_space<vmem>>, %arg5: memref<1x96xf32, #tpu.memory_space<vmem>>, %arg6: memref<16x96xf32, #tpu.memory_space<vmem>>, %arg7: memref<16x96xf32, #tpu.memory_space<vmem>>) attributes {dimension_semantics = [#tpu.dimension_semantics<parallel>, #tpu.dimension_semantics<parallel>, #tpu.dimension_semantics<arbitrary>], iteration_bounds = array<i64: 1, 1, 1>, scalar_prefetch = 0 : i64, scratch_operands = 1 : i64, tpu.core_type = #tpu.core_type<tc>, window_params = [{transform_indices = @transform_0, window_bounds = array<i64: 16, 32>}, {transform_indices = @transform_1, window_bounds = array<i64: 32, 96>}, {transform_indices = @transform_2, window_bounds = array<i64: 1, 96>}, {transform_indices = @transform_3, window_bounds = array<i64: 16, 96>}]} {
    %c0_i32 = arith.constant 0 : i32
    %0 = arith.cmpi eq, %arg2, %c0_i32 : i32
    %1 = arith.extui %0 : i1 to i32
    %c0_i32_0 = arith.constant 0 : i32
    %2 = arith.cmpi ne, %1, %c0_i32_0 : i32
    scf.if %2 {
      %cst_10 = arith.constant 0.000000e+00 : f32
      %12 = vector.broadcast %cst_10 : f32 to vector<16x96xf32>
      %c0_11 = arith.constant 0 : index
      %c0_12 = arith.constant 0 : index
      %13 = vector.load %arg7[%c0_11, %c0_12] : memref<16x96xf32, #tpu.memory_space<vmem>>, vector<16x96xf32>
      tpu.vector_store %arg7[%c0_11, %c0_12], %12 {strides = array<i32>} : memref<16x96xf32, #tpu.memory_space<vmem>>, vector<16x96xf32>,
    } else {
    }
    %c0 = arith.constant 0 : index
    %c0_1 = arith.constant 0 : index
    %3 = vector.load %arg7[%c0, %c0_1] : memref<16x96xf32, #tpu.memory_space<vmem>>, vector<16x96xf32>
    %c0_2 = arith.constant 0 : index
    %c0_3 = arith.constant 0 : index
    %4 = vector.load %arg3[%c0_2, %c0_3] : memref<16x32xf32, #tpu.memory_space<vmem>>, vector<16x32xf32>
    %c0_4 = arith.constant 0 : index
    %c0_5 = arith.constant 0 : index
    %5 = vector.load %arg4[%c0_4, %c0_5] : memref<32x96xf32, #tpu.memory_space<vmem>>, vector<32x96xf32>
    %cst = arith.constant dense<0.000000e+00> : vector<16x96xf32>
    %6 = tpu.matmul %4, %5, %cst {dimension_numbers = #tpu.dot_dimension_numbers<[1], [0], [0], [1], [0, 0, 1, 1], [], []>} : vector<16x32xf32>, vector<32x96xf32>, vector<16x96xf32> -> vector<16x96xf32>
    %7 = arith.addf %3, %6 : vector<16x96xf32>
    %c0_6 = arith.constant 0 : index
    %c0_7 = arith.constant 0 : index
    %8 = vector.load %arg7[%c0_6, %c0_7] : memref<16x96xf32, #tpu.memory_space<vmem>>, vector<16x96xf32>
    tpu.vector_store %arg7[%c0_6, %c0_7], %7 {strides = array<i32>} : memref<16x96xf32, #tpu.memory_space<vmem>>, vector<16x96xf32>,
    %c0_i32_8 = arith.constant 0 : i32
    %9 = arith.cmpi eq, %arg2, %c0_i32_8 : i32
    %10 = arith.extui %9 : i1 to i32
    %c0_i32_9 = arith.constant 0 : i32
    %11 = arith.cmpi ne, %10, %c0_i32_9 : i32
    scf.if %11 {
      %c0_10 = arith.constant 0 : index
      %c0_11 = arith.constant 0 : index
      %12 = vector.load %arg7[%c0_10, %c0_11] : memref<16x96xf32, #tpu.memory_space<vmem>>, vector<16x96xf32>
      %c0_12 = arith.constant 0 : index
      %c0_13 = arith.constant 0 : index
      %13 = vector.load %arg5[%c0_12, %c0_13] : memref<1x96xf32, #tpu.memory_space<vmem>>, vector<1x96xf32>
      %14 = vector.broadcast %13 : vector<1x96xf32> to vector<16x96xf32>
      %15 = arith.addf %12, %14 : vector<16x96xf32>
      %c0_14 = arith.constant 0 : index
      %c0_15 = arith.constant 0 : index
      %16 = vector.load %arg6[%c0_14, %c0_15] : memref<16x96xf32, #tpu.memory_space<vmem>>, vector<16x96xf32>
      tpu.vector_store %arg6[%c0_14, %c0_15], %15 {strides = array<i32>} : memref<16x96xf32, #tpu.memory_space<vmem>>, vector<16x96xf32>,
    } else {
    }
    return
  }
  func.func @transform_0(%arg0: i32, %arg1: i32, %arg2: i32) -> (i32, i32) {
    %c0_i32 = arith.constant 0 : i32
    return %arg0, %arg2 : i32, i32
  }
  func.func @transform_1(%arg0: i32, %arg1: i32, %arg2: i32) -> (i32, i32) {
    %c0_i32 = arith.constant 0 : i32
    return %arg2, %arg1 : i32, i32
  }
  func.func @transform_2(%arg0: i32, %arg1: i32, %arg2: i32) -> (i32, i32) {
    %c0_i32 = arith.constant 0 : i32
    %c0_i32_0 = arith.constant 0 : i32
    return %c0_i32, %arg1 : i32, i32
  }
  func.func @transform_3(%arg0: i32, %arg1: i32, %arg2: i32) -> (i32, i32) {
    %c0_i32 = arith.constant 0 : i32
    return %arg0, %arg1 : i32, i32
  }
}

module attributes {stable_mosaic.version = 11 : i64} {
  func.func @_linear_kernel(%arg0: i32, %arg1: i32, %arg2: i32, %arg3: memref<16x32xf32, #tpu.memory_space<vmem>>, %arg4: memref<32x32xf32, #tpu.memory_space<vmem>>, %arg5: memref<1x32xf32, #tpu.memory_space<vmem>>, %arg6: memref<16x32xf32, #tpu.memory_space<vmem>>, %arg7: memref<16x32xf32, #tpu.memory_space<vmem>>) attributes {dimension_semantics = [#tpu.dimension_semantics<parallel>, #tpu.dimension_semantics<parallel>, #tpu.dimension_semantics<arbitrary>], iteration_bounds = array<i64: 1, 1, 1>, scalar_prefetch = 0 : i64, scratch_operands = 1 : i64, tpu.core_type = #tpu.core_type<tc>, window_params = [{transform_indices = @transform_0, window_bounds = array<i64: 16, 32>}, {transform_indices = @transform_1, window_bounds = array<i64: 32, 32>}, {transform_indices = @transform_2, window_bounds = array<i64: 1, 32>}, {transform_indices = @transform_3, window_bounds = array<i64: 16, 32>}]} {
    %c0_i32 = arith.constant 0 : i32
    %0 = arith.cmpi eq, %arg2, %c0_i32 : i32
    %1 = arith.extui %0 : i1 to i32
    %c0_i32_0 = arith.constant 0 : i32
    %2 = arith.cmpi ne, %1, %c0_i32_0 : i32
    scf.if %2 {
      %cst_10 = arith.constant 0.000000e+00 : f32
      %12 = vector.broadcast %cst_10 : f32 to vector<16x32xf32>
      %c0_11 = arith.constant 0 : index
      %c0_12 = arith.constant 0 : index
      %13 = vector.load %arg7[%c0_11, %c0_12] : memref<16x32xf32, #tpu.memory_space<vmem>>, vector<16x32xf32>
      tpu.vector_store %arg7[%c0_11, %c0_12], %12 {strides = array<i32>} : memref<16x32xf32, #tpu.memory_space<vmem>>, vector<16x32xf32>,
    } else {
    }
    %c0 = arith.constant 0 : index
    %c0_1 = arith.constant 0 : index
    %3 = vector.load %arg7[%c0, %c0_1] : memref<16x32xf32, #tpu.memory_space<vmem>>, vector<16x32xf32>
    %c0_2 = arith.constant 0 : index
    %c0_3 = arith.constant 0 : index
    %4 = vector.load %arg3[%c0_2, %c0_3] : memref<16x32xf32, #tpu.memory_space<vmem>>, vector<16x32xf32>
    %c0_4 = arith.constant 0 : index
    %c0_5 = arith.constant 0 : index
    %5 = vector.load %arg4[%c0_4, %c0_5] : memref<32x32xf32, #tpu.memory_space<vmem>>, vector<32x32xf32>
    %cst = arith.constant dense<0.000000e+00> : vector<16x32xf32>
    %6 = tpu.matmul %4, %5, %cst {dimension_numbers = #tpu.dot_dimension_numbers<[1], [0], [0], [1], [0, 0, 1, 1], [], []>} : vector<16x32xf32>, vector<32x32xf32>, vector<16x32xf32> -> vector<16x32xf32>
    %7 = arith.addf %3, %6 : vector<16x32xf32>
    %c0_6 = arith.constant 0 : index
    %c0_7 = arith.constant 0 : index
    %8 = vector.load %arg7[%c0_6, %c0_7] : memref<16x32xf32, #tpu.memory_space<vmem>>, vector<16x32xf32>
    tpu.vector_store %arg7[%c0_6, %c0_7], %7 {strides = array<i32>} : memref<16x32xf32, #tpu.memory_space<vmem>>, vector<16x32xf32>,
    %c0_i32_8 = arith.constant 0 : i32
    %9 = arith.cmpi eq, %arg2, %c0_i32_8 : i32
    %10 = arith.extui %9 : i1 to i32
    %c0_i32_9 = arith.constant 0 : i32
    %11 = arith.cmpi ne, %10, %c0_i32_9 : i32
    scf.if %11 {
      %c0_10 = arith.constant 0 : index
      %c0_11 = arith.constant 0 : index
      %12 = vector.load %arg7[%c0_10, %c0_11] : memref<16x32xf32, #tpu.memory_space<vmem>>, vector<16x32xf32>
      %c0_12 = arith.constant 0 : index
      %c0_13 = arith.constant 0 : index
      %13 = vector.load %arg5[%c0_12, %c0_13] : memref<1x32xf32, #tpu.memory_space<vmem>>, vector<1x32xf32>
      %14 = vector.broadcast %13 : vector<1x32xf32> to vector<16x32xf32>
      %15 = arith.addf %12, %14 : vector<16x32xf32>
      %c0_14 = arith.constant 0 : index
      %c0_15 = arith.constant 0 : index
      %16 = vector.load %arg6[%c0_14, %c0_15] : memref<16x32xf32, #tpu.memory_space<vmem>>, vector<16x32xf32>
      tpu.vector_store %arg6[%c0_14, %c0_15], %15 {strides = array<i32>} : memref<16x32xf32, #tpu.memory_space<vmem>>, vector<16x32xf32>,
    } else {
    }
    return
  }
  func.func @transform_0(%arg0: i32, %arg1: i32, %arg2: i32) -> (i32, i32) {
    %c0_i32 = arith.constant 0 : i32
    return %arg0, %arg2 : i32, i32
  }
  func.func @transform_1(%arg0: i32, %arg1: i32, %arg2: i32) -> (i32, i32) {
    %c0_i32 = arith.constant 0 : i32
    return %arg2, %arg1 : i32, i32
  }
  func.func @transform_2(%arg0: i32, %arg1: i32, %arg2: i32) -> (i32, i32) {
    %c0_i32 = arith.constant 0 : i32
    %c0_i32_0 = arith.constant 0 : i32
    return %c0_i32, %arg1 : i32, i32
  }
  func.func @transform_3(%arg0: i32, %arg1: i32, %arg2: i32) -> (i32, i32) {
    %c0_i32 = arith.constant 0 : i32
    return %arg0, %arg1 : i32, i32
  }
}

module attributes {stable_mosaic.version = 11 : i64} {
  func.func @_flash_attn_kernel(%arg0: i32, %arg1: i32, %arg2: i32, %arg3: memref<1x8x1x4x8xf32, #tpu.memory_space<vmem>>, %arg4: memref<1x8x1x4x8xf32, #tpu.memory_space<vmem>>, %arg5: memref<1x8x1x4x8xf32, #tpu.memory_space<vmem>>, %arg6: memref<1x8x32xf32, #tpu.memory_space<vmem>>, %arg7: memref<4x8x1xf32, #tpu.memory_space<vmem>>, %arg8: memref<4x8x1xf32, #tpu.memory_space<vmem>>, %arg9: memref<4x8x8xf32, #tpu.memory_space<vmem>>) attributes {dimension_semantics = [#tpu.dimension_semantics<parallel>, #tpu.dimension_semantics<parallel>, #tpu.dimension_semantics<arbitrary>], iteration_bounds = array<i64: 2, 1, 1>, scalar_prefetch = 0 : i64, scratch_operands = 3 : i64, tpu.core_type = #tpu.core_type<tc>, window_params = [{transform_indices = @transform_0, window_bounds = array<i64: 1, 8, 1, 4, 8>}, {transform_indices = @transform_1, window_bounds = array<i64: 1, 8, 1, 4, 8>}, {transform_indices = @transform_2, window_bounds = array<i64: 1, 8, 1, 4, 8>}, {transform_indices = @transform_3, window_bounds = array<i64: 1, 8, 32>}]} {
    %c0_i32 = arith.constant 0 : i32
    %0 = arith.cmpi eq, %arg2, %c0_i32 : i32
    %1 = arith.extui %0 : i1 to i32
    %c0_i32_0 = arith.constant 0 : i32
    %2 = arith.cmpi ne, %1, %c0_i32_0 : i32
    scf.if %2 {
      %cst = arith.constant 0xFF800000 : f32
      %9 = vector.broadcast %cst : f32 to vector<4x8x1xf32>
      %c0 = arith.constant 0 : index
      %c0_3 = arith.constant 0 : index
      %c0_4 = arith.constant 0 : index
      %10 = vector.load %arg7[%c0, %c0_3, %c0_4] : memref<4x8x1xf32, #tpu.memory_space<vmem>>, vector<4x8x1xf32>
      tpu.vector_store %arg7[%c0, %c0_3, %c0_4], %9 {strides = array<i32>} : memref<4x8x1xf32, #tpu.memory_space<vmem>>, vector<4x8x1xf32>,
      %cst_5 = arith.constant 0.000000e+00 : f32
      %11 = vector.broadcast %cst_5 : f32 to vector<4x8x1xf32>
      %c0_6 = arith.constant 0 : index
      %c0_7 = arith.constant 0 : index
      %c0_8 = arith.constant 0 : index
      %12 = vector.load %arg8[%c0_6, %c0_7, %c0_8] : memref<4x8x1xf32, #tpu.memory_space<vmem>>, vector<4x8x1xf32>
      tpu.vector_store %arg8[%c0_6, %c0_7, %c0_8], %11 {strides = array<i32>} : memref<4x8x1xf32, #tpu.memory_space<vmem>>, vector<4x8x1xf32>,
      %cst_9 = arith.constant 0.000000e+00 : f32
      %13 = vector.broadcast %cst_9 : f32 to vector<4x8x8xf32>
      %c0_10 = arith.constant 0 : index
      %c0_11 = arith.constant 0 : index
      %c0_12 = arith.constant 0 : index
      %14 = vector.load %arg9[%c0_10, %c0_11, %c0_12] : memref<4x8x8xf32, #tpu.memory_space<vmem>>, vector<4x8x8xf32>
      tpu.vector_store %arg9[%c0_10, %c0_11, %c0_12], %13 {strides = array<i32>} : memref<4x8x8xf32, #tpu.memory_space<vmem>>, vector<4x8x8xf32>,
    } else {
    }
    %3 = arith.cmpi sle, %arg2, %arg1 : i32
    %4 = arith.extui %3 : i1 to i32
    %c0_i32_1 = arith.constant 0 : i32
    %5 = arith.cmpi ne, %4, %c0_i32_1 : i32
    scf.if %5 {
      %c0 = arith.constant 0 : index
      %c0_3 = arith.constant 0 : index
      %c0_4 = arith.constant 0 : index
      %c0_5 = arith.constant 0 : index
      %c0_6 = arith.constant 0 : index
      %9 = vector.load %arg3[%c0, %c0_3, %c0_4, %c0_5, %c0_6] : memref<1x8x1x4x8xf32, #tpu.memory_space<vmem>>, vector<1x8x1x4x8xf32>
      %10 = vector.shape_cast %9 : vector<1x8x1x4x8xf32> to vector<8x4x8xf32>
      %c0_7 = arith.constant 0 : index
      %c0_8 = arith.constant 0 : index
      %c0_9 = arith.constant 0 : index
      %c0_10 = arith.constant 0 : index
      %c0_11 = arith.constant 0 : index
      %11 = vector.load %arg4[%c0_7, %c0_8, %c0_9, %c0_10, %c0_11] : memref<1x8x1x4x8xf32, #tpu.memory_space<vmem>>, vector<1x8x1x4x8xf32>
      %12 = vector.shape_cast %11 : vector<1x8x1x4x8xf32> to vector<8x4x8xf32>
      %c0_12 = arith.constant 0 : index
      %c0_13 = arith.constant 0 : index
      %c0_14 = arith.constant 0 : index
      %c0_15 = arith.constant 0 : index
      %c0_16 = arith.constant 0 : index
      %13 = vector.load %arg5[%c0_12, %c0_13, %c0_14, %c0_15, %c0_16] : memref<1x8x1x4x8xf32, #tpu.memory_space<vmem>>, vector<1x8x1x4x8xf32>
      %14 = vector.shape_cast %13 : vector<1x8x1x4x8xf32> to vector<8x4x8xf32>
      %15 = tpu.iota {dimensions = array<i32: 0>} : vector<8x8xi32>
      %c8_i32 = arith.constant 8 : i32
      %16 = arith.muli %arg1, %c8_i32 : i32
      %17 = vector.broadcast %16 : i32 to vector<8x8xi32>
      %18 = arith.addi %15, %17 : vector<8x8xi32>
      %19 = tpu.iota {dimensions = array<i32: 1>} : vector<8x8xi32>
      %c8_i32_17 = arith.constant 8 : i32
      %20 = arith.muli %arg2, %c8_i32_17 : i32
      %21 = vector.broadcast %20 : i32 to vector<8x8xi32>
      %22 = arith.addi %19, %21 : vector<8x8xi32>
      %23 = arith.cmpi sle, %22, %18 : vector<8x8xi32>
      %24 = vector.extract_strided_slice %10 {offsets = [0, 0, 0], sizes = [8, 1, 8], strides = [1, 1, 1]} : vector<8x4x8xf32> to vector<8x1x8xf32>
      %25 = vector.shape_cast %24 : vector<8x1x8xf32> to vector<8x8xf32>
      %26 = vector.extract_strided_slice %12 {offsets = [0, 0, 0], sizes = [8, 1, 8], strides = [1, 1, 1]} : vector<8x4x8xf32> to vector<8x1x8xf32>
      %27 = vector.shape_cast %26 : vector<8x1x8xf32> to vector<8x8xf32>
      %28 = vector.extract_strided_slice %14 {offsets = [0, 0, 0], sizes = [8, 1, 8], strides = [1, 1, 1]} : vector<8x4x8xf32> to vector<8x1x8xf32>
      %29 = vector.shape_cast %28 : vector<8x1x8xf32> to vector<8x8xf32>
      %cst = arith.constant dense<0.000000e+00> : vector<8x8xf32>
      %30 = tpu.matmul %25, %27, %cst {dimension_numbers = #tpu.dot_dimension_numbers<[1], [1], [0], [0], [0, 0, 1, 0], [], []>} : vector<8x8xf32>, vector<8x8xf32>, vector<8x8xf32> -> vector<8x8xf32>
      %cst_18 = arith.constant 0.353553385 : f32
      %31 = vector.broadcast %cst_18 : f32 to vector<8x8xf32>
      %32 = arith.mulf %30, %31 : vector<8x8xf32>
      %cst_19 = arith.constant 0xFF800000 : f32
      %33 = vector.broadcast %cst_19 : f32 to vector<8x8xf32>
      %34 = arith.select %23, %32, %33 : vector<8x8xi1>, vector<8x8xf32>
      %c0_20 = arith.constant 0 : index
      %c0_21 = arith.constant 0 : index
      %c0_22 = arith.constant 0 : index
      %35 = vector.load %arg7[%c0_20, %c0_21, %c0_22] : memref<4x8x1xf32, #tpu.memory_space<vmem>>, vector<1x8x1xf32>
      %36 = vector.shape_cast %35 : vector<1x8x1xf32> to vector<8x1xf32>
      %cst_23 = arith.constant dense<0xFF800000> : vector<8xf32>
      %37 = vector.multi_reduction <maximumf>, %34, %cst_23 [1] : vector<8x8xf32> to vector<8xf32>
      %38 = vector.shape_cast %37 : vector<8xf32> to vector<8x1xf32>
      %39 = arith.maximumf %36, %38 : vector<8x1xf32>
      %40 = arith.subf %36, %39 : vector<8x1xf32>
      %41 = math.exp %40 : vector<8x1xf32>
      %42 = vector.broadcast %39 : vector<8x1xf32> to vector<8x8xf32>
      %43 = arith.subf %34, %42 : vector<8x8xf32>
      %44 = math.exp %43 : vector<8x8xf32>
      %c0_24 = arith.constant 0 : index
      %c0_25 = arith.constant 0 : index
      %c0_26 = arith.constant 0 : index
      %45 = vector.load %arg8[%c0_24, %c0_25, %c0_26] : memref<4x8x1xf32, #tpu.memory_space<vmem>>, vector<1x8x1xf32>
      %46 = vector.shape_cast %45 : vector<1x8x1xf32> to vector<8x1xf32>
      %47 = arith.mulf %41, %46 : vector<8x1xf32>
      %cst_27 = arith.constant dense<0.000000e+00> : vector<8xf32>
      %48 = vector.multi_reduction <add>, %44, %cst_27 [1] : vector<8x8xf32> to vector<8xf32>
      %49 = vector.shape_cast %48 : vector<8xf32> to vector<8x1xf32>
      %50 = arith.addf %47, %49 : vector<8x1xf32>
      %c0_28 = arith.constant 0 : index
      %c0_29 = arith.constant 0 : index
      %c0_30 = arith.constant 0 : index
      %51 = vector.load %arg8[%c0_28, %c0_29, %c0_30] : memref<4x8x1xf32, #tpu.memory_space<vmem>>, vector<1x8x1xf32>
      %52 = vector.shape_cast %51 : vector<1x8x1xf32> to vector<8x1xf32>
      %53 = vector.shape_cast %50 : vector<8x1xf32> to vector<1x8x1xf32>
      tpu.vector_store %arg8[%c0_28, %c0_29, %c0_30], %53 {strides = array<i32>} : memref<4x8x1xf32, #tpu.memory_space<vmem>>, vector<1x8x1xf32>,
      %c0_31 = arith.constant 0 : index
      %c0_32 = arith.constant 0 : index
      %c0_33 = arith.constant 0 : index
      %54 = vector.load %arg9[%c0_31, %c0_32, %c0_33] : memref<4x8x8xf32, #tpu.memory_space<vmem>>, vector<1x8x8xf32>
      %55 = vector.shape_cast %54 : vector<1x8x8xf32> to vector<8x8xf32>
      %56 = vector.broadcast %41 : vector<8x1xf32> to vector<8x8xf32>
      %57 = arith.mulf %56, %55 : vector<8x8xf32>
      %cst_34 = arith.constant dense<0.000000e+00> : vector<8x8xf32>
      %58 = tpu.matmul %44, %29, %cst_34 {dimension_numbers = #tpu.dot_dimension_numbers<[1], [0], [0], [1], [0, 0, 1, 1], [], []>} : vector<8x8xf32>, vector<8x8xf32>, vector<8x8xf32> -> vector<8x8xf32>
      %59 = arith.addf %57, %58 : vector<8x8xf32>
      %c0_35 = arith.constant 0 : index
      %c0_36 = arith.constant 0 : index
      %c0_37 = arith.constant 0 : index
      %60 = vector.load %arg9[%c0_35, %c0_36, %c0_37] : memref<4x8x8xf32, #tpu.memory_space<vmem>>, vector<1x8x8xf32>
      %61 = vector.shape_cast %60 : vector<1x8x8xf32> to vector<8x8xf32>
      %62 = vector.shape_cast %59 : vector<8x8xf32> to vector<1x8x8xf32>
      tpu.vector_store %arg9[%c0_35, %c0_36, %c0_37], %62 {strides = array<i32>} : memref<4x8x8xf32, #tpu.memory_space<vmem>>, vector<1x8x8xf32>,
      %c0_38 = arith.constant 0 : index
      %c0_39 = arith.constant 0 : index
      %c0_40 = arith.constant 0 : index
      %63 = vector.load %arg7[%c0_38, %c0_39, %c0_40] : memref<4x8x1xf32, #tpu.memory_space<vmem>>, vector<1x8x1xf32>
      %64 = vector.shape_cast %63 : vector<1x8x1xf32> to vector<8x1xf32>
      %65 = vector.shape_cast %39 : vector<8x1xf32> to vector<1x8x1xf32>
      tpu.vector_store %arg7[%c0_38, %c0_39, %c0_40], %65 {strides = array<i32>} : memref<4x8x1xf32, #tpu.memory_space<vmem>>, vector<1x8x1xf32>,
      %66 = vector.extract_strided_slice %10 {offsets = [0, 1, 0], sizes = [8, 1, 8], strides = [1, 1, 1]} : vector<8x4x8xf32> to vector<8x1x8xf32>
      %67 = vector.shape_cast %66 : vector<8x1x8xf32> to vector<8x8xf32>
      %68 = vector.extract_strided_slice %12 {offsets = [0, 1, 0], sizes = [8, 1, 8], strides = [1, 1, 1]} : vector<8x4x8xf32> to vector<8x1x8xf32>
      %69 = vector.shape_cast %68 : vector<8x1x8xf32> to vector<8x8xf32>
      %70 = vector.extract_strided_slice %14 {offsets = [0, 1, 0], sizes = [8, 1, 8], strides = [1, 1, 1]} : vector<8x4x8xf32> to vector<8x1x8xf32>
      %71 = vector.shape_cast %70 : vector<8x1x8xf32> to vector<8x8xf32>
      %cst_41 = arith.constant dense<0.000000e+00> : vector<8x8xf32>
      %72 = tpu.matmul %67, %69, %cst_41 {dimension_numbers = #tpu.dot_dimension_numbers<[1], [1], [0], [0], [0, 0, 1, 0], [], []>} : vector<8x8xf32>, vector<8x8xf32>, vector<8x8xf32> -> vector<8x8xf32>
      %cst_42 = arith.constant 0.353553385 : f32
      %73 = vector.broadcast %cst_42 : f32 to vector<8x8xf32>
      %74 = arith.mulf %72, %73 : vector<8x8xf32>
      %cst_43 = arith.constant 0xFF800000 : f32
      %75 = vector.broadcast %cst_43 : f32 to vector<8x8xf32>
      %76 = arith.select %23, %74, %75 : vector<8x8xi1>, vector<8x8xf32>
      %c1 = arith.constant 1 : index
      %c0_44 = arith.constant 0 : index
      %c0_45 = arith.constant 0 : index
      %77 = vector.load %arg7[%c1, %c0_44, %c0_45] : memref<4x8x1xf32, #tpu.memory_space<vmem>>, vector<1x8x1xf32>
      %78 = vector.shape_cast %77 : vector<1x8x1xf32> to vector<8x1xf32>
      %cst_46 = arith.constant dense<0xFF800000> : vector<8xf32>
      %79 = vector.multi_reduction <maximumf>, %76, %cst_46 [1] : vector<8x8xf32> to vector<8xf32>
      %80 = vector.shape_cast %79 : vector<8xf32> to vector<8x1xf32>
      %81 = arith.maximumf %78, %80 : vector<8x1xf32>
      %82 = arith.subf %78, %81 : vector<8x1xf32>
      %83 = math.exp %82 : vector<8x1xf32>
      %84 = vector.broadcast %81 : vector<8x1xf32> to vector<8x8xf32>
      %85 = arith.subf %76, %84 : vector<8x8xf32>
      %86 = math.exp %85 : vector<8x8xf32>
      %c1_47 = arith.constant 1 : index
      %c0_48 = arith.constant 0 : index
      %c0_49 = arith.constant 0 : index
      %87 = vector.load %arg8[%c1_47, %c0_48, %c0_49] : memref<4x8x1xf32, #tpu.memory_space<vmem>>, vector<1x8x1xf32>
      %88 = vector.shape_cast %87 : vector<1x8x1xf32> to vector<8x1xf32>
      %89 = arith.mulf %83, %88 : vector<8x1xf32>
      %cst_50 = arith.constant dense<0.000000e+00> : vector<8xf32>
      %90 = vector.multi_reduction <add>, %86, %cst_50 [1] : vector<8x8xf32> to vector<8xf32>
      %91 = vector.shape_cast %90 : vector<8xf32> to vector<8x1xf32>
      %92 = arith.addf %89, %91 : vector<8x1xf32>
      %c1_51 = arith.constant 1 : index
      %c0_52 = arith.constant 0 : index
      %c0_53 = arith.constant 0 : index
      %93 = vector.load %arg8[%c1_51, %c0_52, %c0_53] : memref<4x8x1xf32, #tpu.memory_space<vmem>>, vector<1x8x1xf32>
      %94 = vector.shape_cast %93 : vector<1x8x1xf32> to vector<8x1xf32>
      %95 = vector.shape_cast %92 : vector<8x1xf32> to vector<1x8x1xf32>
      tpu.vector_store %arg8[%c1_51, %c0_52, %c0_53], %95 {strides = array<i32>} : memref<4x8x1xf32, #tpu.memory_space<vmem>>, vector<1x8x1xf32>,
      %c1_54 = arith.constant 1 : index
      %c0_55 = arith.constant 0 : index
      %c0_56 = arith.constant 0 : index
      %96 = vector.load %arg9[%c1_54, %c0_55, %c0_56] : memref<4x8x8xf32, #tpu.memory_space<vmem>>, vector<1x8x8xf32>
      %97 = vector.shape_cast %96 : vector<1x8x8xf32> to vector<8x8xf32>
      %98 = vector.broadcast %83 : vector<8x1xf32> to vector<8x8xf32>
      %99 = arith.mulf %98, %97 : vector<8x8xf32>
      %cst_57 = arith.constant dense<0.000000e+00> : vector<8x8xf32>
      %100 = tpu.matmul %86, %71, %cst_57 {dimension_numbers = #tpu.dot_dimension_numbers<[1], [0], [0], [1], [0, 0, 1, 1], [], []>} : vector<8x8xf32>, vector<8x8xf32>, vector<8x8xf32> -> vector<8x8xf32>
      %101 = arith.addf %99, %100 : vector<8x8xf32>
      %c1_58 = arith.constant 1 : index
      %c0_59 = arith.constant 0 : index
      %c0_60 = arith.constant 0 : index
      %102 = vector.load %arg9[%c1_58, %c0_59, %c0_60] : memref<4x8x8xf32, #tpu.memory_space<vmem>>, vector<1x8x8xf32>
      %103 = vector.shape_cast %102 : vector<1x8x8xf32> to vector<8x8xf32>
      %104 = vector.shape_cast %101 : vector<8x8xf32> to vector<1x8x8xf32>
      tpu.vector_store %arg9[%c1_58, %c0_59, %c0_60], %104 {strides = array<i32>} : memref<4x8x8xf32, #tpu.memory_space<vmem>>, vector<1x8x8xf32>,
      %c1_61 = arith.constant 1 : index
      %c0_62 = arith.constant 0 : index
      %c0_63 = arith.constant 0 : index
      %105 = vector.load %arg7[%c1_61, %c0_62, %c0_63] : memref<4x8x1xf32, #tpu.memory_space<vmem>>, vector<1x8x1xf32>
      %106 = vector.shape_cast %105 : vector<1x8x1xf32> to vector<8x1xf32>
      %107 = vector.shape_cast %81 : vector<8x1xf32> to vector<1x8x1xf32>
      tpu.vector_store %arg7[%c1_61, %c0_62, %c0_63], %107 {strides = array<i32>} : memref<4x8x1xf32, #tpu.memory_space<vmem>>, vector<1x8x1xf32>,
      %108 = vector.extract_strided_slice %10 {offsets = [0, 2, 0], sizes = [8, 1, 8], strides = [1, 1, 1]} : vector<8x4x8xf32> to vector<8x1x8xf32>
      %109 = vector.shape_cast %108 : vector<8x1x8xf32> to vector<8x8xf32>
      %110 = vector.extract_strided_slice %12 {offsets = [0, 2, 0], sizes = [8, 1, 8], strides = [1, 1, 1]} : vector<8x4x8xf32> to vector<8x1x8xf32>
      %111 = vector.shape_cast %110 : vector<8x1x8xf32> to vector<8x8xf32>
      %112 = vector.extract_strided_slice %14 {offsets = [0, 2, 0], sizes = [8, 1, 8], strides = [1, 1, 1]} : vector<8x4x8xf32> to vector<8x1x8xf32>
      %113 = vector.shape_cast %112 : vector<8x1x8xf32> to vector<8x8xf32>
      %cst_64 = arith.constant dense<0.000000e+00> : vector<8x8xf32>
      %114 = tpu.matmul %109, %111, %cst_64 {dimension_numbers = #tpu.dot_dimension_numbers<[1], [1], [0], [0], [0, 0, 1, 0], [], []>} : vector<8x8xf32>, vector<8x8xf32>, vector<8x8xf32> -> vector<8x8xf32>
      %cst_65 = arith.constant 0.353553385 : f32
      %115 = vector.broadcast %cst_65 : f32 to vector<8x8xf32>
      %116 = arith.mulf %114, %115 : vector<8x8xf32>
      %cst_66 = arith.constant 0xFF800000 : f32
      %117 = vector.broadcast %cst_66 : f32 to vector<8x8xf32>
      %118 = arith.select %23, %116, %117 : vector<8x8xi1>, vector<8x8xf32>
      %c2 = arith.constant 2 : index
      %c0_67 = arith.constant 0 : index
      %c0_68 = arith.constant 0 : index
      %119 = vector.load %arg7[%c2, %c0_67, %c0_68] : memref<4x8x1xf32, #tpu.memory_space<vmem>>, vector<1x8x1xf32>
      %120 = vector.shape_cast %119 : vector<1x8x1xf32> to vector<8x1xf32>
      %cst_69 = arith.constant dense<0xFF800000> : vector<8xf32>
      %121 = vector.multi_reduction <maximumf>, %118, %cst_69 [1] : vector<8x8xf32> to vector<8xf32>
      %122 = vector.shape_cast %121 : vector<8xf32> to vector<8x1xf32>
      %123 = arith.maximumf %120, %122 : vector<8x1xf32>
      %124 = arith.subf %120, %123 : vector<8x1xf32>
      %125 = math.exp %124 : vector<8x1xf32>
      %126 = vector.broadcast %123 : vector<8x1xf32> to vector<8x8xf32>
      %127 = arith.subf %118, %126 : vector<8x8xf32>
      %128 = math.exp %127 : vector<8x8xf32>
      %c2_70 = arith.constant 2 : index
      %c0_71 = arith.constant 0 : index
      %c0_72 = arith.constant 0 : index
      %129 = vector.load %arg8[%c2_70, %c0_71, %c0_72] : memref<4x8x1xf32, #tpu.memory_space<vmem>>, vector<1x8x1xf32>
      %130 = vector.shape_cast %129 : vector<1x8x1xf32> to vector<8x1xf32>
      %131 = arith.mulf %125, %130 : vector<8x1xf32>
      %cst_73 = arith.constant dense<0.000000e+00> : vector<8xf32>
      %132 = vector.multi_reduction <add>, %128, %cst_73 [1] : vector<8x8xf32> to vector<8xf32>
      %133 = vector.shape_cast %132 : vector<8xf32> to vector<8x1xf32>
      %134 = arith.addf %131, %133 : vector<8x1xf32>
      %c2_74 = arith.constant 2 : index
      %c0_75 = arith.constant 0 : index
      %c0_76 = arith.constant 0 : index
      %135 = vector.load %arg8[%c2_74, %c0_75, %c0_76] : memref<4x8x1xf32, #tpu.memory_space<vmem>>, vector<1x8x1xf32>
      %136 = vector.shape_cast %135 : vector<1x8x1xf32> to vector<8x1xf32>
      %137 = vector.shape_cast %134 : vector<8x1xf32> to vector<1x8x1xf32>
      tpu.vector_store %arg8[%c2_74, %c0_75, %c0_76], %137 {strides = array<i32>} : memref<4x8x1xf32, #tpu.memory_space<vmem>>, vector<1x8x1xf32>,
      %c2_77 = arith.constant 2 : index
      %c0_78 = arith.constant 0 : index
      %c0_79 = arith.constant 0 : index
      %138 = vector.load %arg9[%c2_77, %c0_78, %c0_79] : memref<4x8x8xf32, #tpu.memory_space<vmem>>, vector<1x8x8xf32>
      %139 = vector.shape_cast %138 : vector<1x8x8xf32> to vector<8x8xf32>
      %140 = vector.broadcast %125 : vector<8x1xf32> to vector<8x8xf32>
      %141 = arith.mulf %140, %139 : vector<8x8xf32>
      %cst_80 = arith.constant dense<0.000000e+00> : vector<8x8xf32>
      %142 = tpu.matmul %128, %113, %cst_80 {dimension_numbers = #tpu.dot_dimension_numbers<[1], [0], [0], [1], [0, 0, 1, 1], [], []>} : vector<8x8xf32>, vector<8x8xf32>, vector<8x8xf32> -> vector<8x8xf32>
      %143 = arith.addf %141, %142 : vector<8x8xf32>
      %c2_81 = arith.constant 2 : index
      %c0_82 = arith.constant 0 : index
      %c0_83 = arith.constant 0 : index
      %144 = vector.load %arg9[%c2_81, %c0_82, %c0_83] : memref<4x8x8xf32, #tpu.memory_space<vmem>>, vector<1x8x8xf32>
      %145 = vector.shape_cast %144 : vector<1x8x8xf32> to vector<8x8xf32>
      %146 = vector.shape_cast %143 : vector<8x8xf32> to vector<1x8x8xf32>
      tpu.vector_store %arg9[%c2_81, %c0_82, %c0_83], %146 {strides = array<i32>} : memref<4x8x8xf32, #tpu.memory_space<vmem>>, vector<1x8x8xf32>,
      %c2_84 = arith.constant 2 : index
      %c0_85 = arith.constant 0 : index
      %c0_86 = arith.constant 0 : index
      %147 = vector.load %arg7[%c2_84, %c0_85, %c0_86] : memref<4x8x1xf32, #tpu.memory_space<vmem>>, vector<1x8x1xf32>
      %148 = vector.shape_cast %147 : vector<1x8x1xf32> to vector<8x1xf32>
      %149 = vector.shape_cast %123 : vector<8x1xf32> to vector<1x8x1xf32>
      tpu.vector_store %arg7[%c2_84, %c0_85, %c0_86], %149 {strides = array<i32>} : memref<4x8x1xf32, #tpu.memory_space<vmem>>, vector<1x8x1xf32>,
      %150 = vector.extract_strided_slice %10 {offsets = [0, 3, 0], sizes = [8, 1, 8], strides = [1, 1, 1]} : vector<8x4x8xf32> to vector<8x1x8xf32>
      %151 = vector.shape_cast %150 : vector<8x1x8xf32> to vector<8x8xf32>
      %152 = vector.extract_strided_slice %12 {offsets = [0, 3, 0], sizes = [8, 1, 8], strides = [1, 1, 1]} : vector<8x4x8xf32> to vector<8x1x8xf32>
      %153 = vector.shape_cast %152 : vector<8x1x8xf32> to vector<8x8xf32>
      %154 = vector.extract_strided_slice %14 {offsets = [0, 3, 0], sizes = [8, 1, 8], strides = [1, 1, 1]} : vector<8x4x8xf32> to vector<8x1x8xf32>
      %155 = vector.shape_cast %154 : vector<8x1x8xf32> to vector<8x8xf32>
      %cst_87 = arith.constant dense<0.000000e+00> : vector<8x8xf32>
      %156 = tpu.matmul %151, %153, %cst_87 {dimension_numbers = #tpu.dot_dimension_numbers<[1], [1], [0], [0], [0, 0, 1, 0], [], []>} : vector<8x8xf32>, vector<8x8xf32>, vector<8x8xf32> -> vector<8x8xf32>
      %cst_88 = arith.constant 0.353553385 : f32
      %157 = vector.broadcast %cst_88 : f32 to vector<8x8xf32>
      %158 = arith.mulf %156, %157 : vector<8x8xf32>
      %cst_89 = arith.constant 0xFF800000 : f32
      %159 = vector.broadcast %cst_89 : f32 to vector<8x8xf32>
      %160 = arith.select %23, %158, %159 : vector<8x8xi1>, vector<8x8xf32>
      %c3 = arith.constant 3 : index
      %c0_90 = arith.constant 0 : index
      %c0_91 = arith.constant 0 : index
      %161 = vector.load %arg7[%c3, %c0_90, %c0_91] : memref<4x8x1xf32, #tpu.memory_space<vmem>>, vector<1x8x1xf32>
      %162 = vector.shape_cast %161 : vector<1x8x1xf32> to vector<8x1xf32>
      %cst_92 = arith.constant dense<0xFF800000> : vector<8xf32>
      %163 = vector.multi_reduction <maximumf>, %160, %cst_92 [1] : vector<8x8xf32> to vector<8xf32>
      %164 = vector.shape_cast %163 : vector<8xf32> to vector<8x1xf32>
      %165 = arith.maximumf %162, %164 : vector<8x1xf32>
      %166 = arith.subf %162, %165 : vector<8x1xf32>
      %167 = math.exp %166 : vector<8x1xf32>
      %168 = vector.broadcast %165 : vector<8x1xf32> to vector<8x8xf32>
      %169 = arith.subf %160, %168 : vector<8x8xf32>
      %170 = math.exp %169 : vector<8x8xf32>
      %c3_93 = arith.constant 3 : index
      %c0_94 = arith.constant 0 : index
      %c0_95 = arith.constant 0 : index
      %171 = vector.load %arg8[%c3_93, %c0_94, %c0_95] : memref<4x8x1xf32, #tpu.memory_space<vmem>>, vector<1x8x1xf32>
      %172 = vector.shape_cast %171 : vector<1x8x1xf32> to vector<8x1xf32>
      %173 = arith.mulf %167, %172 : vector<8x1xf32>
      %cst_96 = arith.constant dense<0.000000e+00> : vector<8xf32>
      %174 = vector.multi_reduction <add>, %170, %cst_96 [1] : vector<8x8xf32> to vector<8xf32>
      %175 = vector.shape_cast %174 : vector<8xf32> to vector<8x1xf32>
      %176 = arith.addf %173, %175 : vector<8x1xf32>
      %c3_97 = arith.constant 3 : index
      %c0_98 = arith.constant 0 : index
      %c0_99 = arith.constant 0 : index
      %177 = vector.load %arg8[%c3_97, %c0_98, %c0_99] : memref<4x8x1xf32, #tpu.memory_space<vmem>>, vector<1x8x1xf32>
      %178 = vector.shape_cast %177 : vector<1x8x1xf32> to vector<8x1xf32>
      %179 = vector.shape_cast %176 : vector<8x1xf32> to vector<1x8x1xf32>
      tpu.vector_store %arg8[%c3_97, %c0_98, %c0_99], %179 {strides = array<i32>} : memref<4x8x1xf32, #tpu.memory_space<vmem>>, vector<1x8x1xf32>,
      %c3_100 = arith.constant 3 : index
      %c0_101 = arith.constant 0 : index
      %c0_102 = arith.constant 0 : index
      %180 = vector.load %arg9[%c3_100, %c0_101, %c0_102] : memref<4x8x8xf32, #tpu.memory_space<vmem>>, vector<1x8x8xf32>
      %181 = vector.shape_cast %180 : vector<1x8x8xf32> to vector<8x8xf32>
      %182 = vector.broadcast %167 : vector<8x1xf32> to vector<8x8xf32>
      %183 = arith.mulf %182, %181 : vector<8x8xf32>
      %cst_103 = arith.constant dense<0.000000e+00> : vector<8x8xf32>
      %184 = tpu.matmul %170, %155, %cst_103 {dimension_numbers = #tpu.dot_dimension_numbers<[1], [0], [0], [1], [0, 0, 1, 1], [], []>} : vector<8x8xf32>, vector<8x8xf32>, vector<8x8xf32> -> vector<8x8xf32>
      %185 = arith.addf %183, %184 : vector<8x8xf32>
      %c3_104 = arith.constant 3 : index
      %c0_105 = arith.constant 0 : index
      %c0_106 = arith.constant 0 : index
      %186 = vector.load %arg9[%c3_104, %c0_105, %c0_106] : memref<4x8x8xf32, #tpu.memory_space<vmem>>, vector<1x8x8xf32>
      %187 = vector.shape_cast %186 : vector<1x8x8xf32> to vector<8x8xf32>
      %188 = vector.shape_cast %185 : vector<8x8xf32> to vector<1x8x8xf32>
      tpu.vector_store %arg9[%c3_104, %c0_105, %c0_106], %188 {strides = array<i32>} : memref<4x8x8xf32, #tpu.memory_space<vmem>>, vector<1x8x8xf32>,
      %c3_107 = arith.constant 3 : index
      %c0_108 = arith.constant 0 : index
      %c0_109 = arith.constant 0 : index
      %189 = vector.load %arg7[%c3_107, %c0_108, %c0_109] : memref<4x8x1xf32, #tpu.memory_space<vmem>>, vector<1x8x1xf32>
      %190 = vector.shape_cast %189 : vector<1x8x1xf32> to vector<8x1xf32>
      %191 = vector.shape_cast %165 : vector<8x1xf32> to vector<1x8x1xf32>
      tpu.vector_store %arg7[%c3_107, %c0_108, %c0_109], %191 {strides = array<i32>} : memref<4x8x1xf32, #tpu.memory_space<vmem>>, vector<1x8x1xf32>,
    } else {
    }
    %6 = arith.cmpi eq, %arg2, %arg1 : i32
    %7 = arith.extui %6 : i1 to i32
    %c0_i32_2 = arith.constant 0 : i32
    %8 = arith.cmpi ne, %7, %c0_i32_2 : i32
    scf.if %8 {
      %c0 = arith.constant 0 : index
      %c0_3 = arith.constant 0 : index
      %c0_4 = arith.constant 0 : index
      %9 = vector.load %arg8[%c0, %c0_3, %c0_4] : memref<4x8x1xf32, #tpu.memory_space<vmem>>, vector<1x8x1xf32>
      %10 = vector.shape_cast %9 : vector<1x8x1xf32> to vector<8x1xf32>
      %11 = tpu.reciprocal %10 : vector<8x1xf32> -> vector<8x1xf32>
      %c0_5 = arith.constant 0 : index
      %c0_6 = arith.constant 0 : index
      %c0_7 = arith.constant 0 : index
      %12 = vector.load %arg9[%c0_5, %c0_6, %c0_7] : memref<4x8x8xf32, #tpu.memory_space<vmem>>, vector<1x8x8xf32>
      %13 = vector.shape_cast %12 : vector<1x8x8xf32> to vector<8x8xf32>
      %14 = vector.broadcast %11 : vector<8x1xf32> to vector<8x8xf32>
      %15 = arith.mulf %13, %14 : vector<8x8xf32>
      %c1 = arith.constant 1 : index
      %c0_8 = arith.constant 0 : index
      %c0_9 = arith.constant 0 : index
      %16 = vector.load %arg8[%c1, %c0_8, %c0_9] : memref<4x8x1xf32, #tpu.memory_space<vmem>>, vector<1x8x1xf32>
      %17 = vector.shape_cast %16 : vector<1x8x1xf32> to vector<8x1xf32>
      %18 = tpu.reciprocal %17 : vector<8x1xf32> -> vector<8x1xf32>
      %c1_10 = arith.constant 1 : index
      %c0_11 = arith.constant 0 : index
      %c0_12 = arith.constant 0 : index
      %19 = vector.load %arg9[%c1_10, %c0_11, %c0_12] : memref<4x8x8xf32, #tpu.memory_space<vmem>>, vector<1x8x8xf32>
      %20 = vector.shape_cast %19 : vector<1x8x8xf32> to vector<8x8xf32>
      %21 = vector.broadcast %18 : vector<8x1xf32> to vector<8x8xf32>
      %22 = arith.mulf %20, %21 : vector<8x8xf32>
      %c2 = arith.constant 2 : index
      %c0_13 = arith.constant 0 : index
      %c0_14 = arith.constant 0 : index
      %23 = vector.load %arg8[%c2, %c0_13, %c0_14] : memref<4x8x1xf32, #tpu.memory_space<vmem>>, vector<1x8x1xf32>
      %24 = vector.shape_cast %23 : vector<1x8x1xf32> to vector<8x1xf32>
      %25 = tpu.reciprocal %24 : vector<8x1xf32> -> vector<8x1xf32>
      %c2_15 = arith.constant 2 : index
      %c0_16 = arith.constant 0 : index
      %c0_17 = arith.constant 0 : index
      %26 = vector.load %arg9[%c2_15, %c0_16, %c0_17] : memref<4x8x8xf32, #tpu.memory_space<vmem>>, vector<1x8x8xf32>
      %27 = vector.shape_cast %26 : vector<1x8x8xf32> to vector<8x8xf32>
      %28 = vector.broadcast %25 : vector<8x1xf32> to vector<8x8xf32>
      %29 = arith.mulf %27, %28 : vector<8x8xf32>
      %c3 = arith.constant 3 : index
      %c0_18 = arith.constant 0 : index
      %c0_19 = arith.constant 0 : index
      %30 = vector.load %arg8[%c3, %c0_18, %c0_19] : memref<4x8x1xf32, #tpu.memory_space<vmem>>, vector<1x8x1xf32>
      %31 = vector.shape_cast %30 : vector<1x8x1xf32> to vector<8x1xf32>
      %32 = tpu.reciprocal %31 : vector<8x1xf32> -> vector<8x1xf32>
      %c3_20 = arith.constant 3 : index
      %c0_21 = arith.constant 0 : index
      %c0_22 = arith.constant 0 : index
      %33 = vector.load %arg9[%c3_20, %c0_21, %c0_22] : memref<4x8x8xf32, #tpu.memory_space<vmem>>, vector<1x8x8xf32>
      %34 = vector.shape_cast %33 : vector<1x8x8xf32> to vector<8x8xf32>
      %35 = vector.broadcast %32 : vector<8x1xf32> to vector<8x8xf32>
      %36 = arith.mulf %34, %35 : vector<8x8xf32>
      %37 = tpu.concatenate %15, %22, %29, %36 in 1 : vector<8x8xf32>, vector<8x8xf32>, vector<8x8xf32>, vector<8x8xf32> -> vector<8x32xf32>
      %c0_23 = arith.constant 0 : index
      %c0_24 = arith.constant 0 : index
      %c0_25 = arith.constant 0 : index
      %38 = vector.load %arg6[%c0_23, %c0_24, %c0_25] : memref<1x8x32xf32, #tpu.memory_space<vmem>>, vector<1x8x32xf32>
      %39 = vector.shape_cast %38 : vector<1x8x32xf32> to vector<8x32xf32>
      %40 = vector.shape_cast %37 : vector<8x32xf32> to vector<1x8x32xf32>
      tpu.vector_store %arg6[%c0_23, %c0_24, %c0_25], %40 {strides = array<i32>} : memref<1x8x32xf32, #tpu.memory_space<vmem>>, vector<1x8x32xf32>,
    } else {
    }
    return
  }
  func.func @transform_0(%arg0: i32, %arg1: i32, %arg2: i32) -> (i32, i32, i32, i32, i32) {
    %c0_i32 = arith.constant 0 : i32
    %c0_i32_0 = arith.constant 0 : i32
    %c0_i32_1 = arith.constant 0 : i32
    %c0_i32_2 = arith.constant 0 : i32
    return %arg0, %arg1, %c0_i32, %c0_i32_0, %c0_i32_1 : i32, i32, i32, i32, i32
  }
  func.func @transform_1(%arg0: i32, %arg1: i32, %arg2: i32) -> (i32, i32, i32, i32, i32) {
    %c1_i32 = arith.constant 1 : i32
    %c0_i32 = arith.constant 0 : i32
    %c0_i32_0 = arith.constant 0 : i32
    %c0_i32_1 = arith.constant 0 : i32
    return %arg0, %arg2, %c1_i32, %c0_i32, %c0_i32_0 : i32, i32, i32, i32, i32
  }
  func.func @transform_2(%arg0: i32, %arg1: i32, %arg2: i32) -> (i32, i32, i32, i32, i32) {
    %c2_i32 = arith.constant 2 : i32
    %c0_i32 = arith.constant 0 : i32
    %c0_i32_0 = arith.constant 0 : i32
    %c0_i32_1 = arith.constant 0 : i32
    return %arg0, %arg2, %c2_i32, %c0_i32, %c0_i32_0 : i32, i32, i32, i32, i32
  }
  func.func @transform_3(%arg0: i32, %arg1: i32, %arg2: i32) -> (i32, i32, i32) {
    %c0_i32 = arith.constant 0 : i32
    %c0_i32_0 = arith.constant 0 : i32
    return %arg0, %arg1, %c0_i32 : i32, i32, i32
  }
}

</mosaic_0001>

<bundles_post_ra>
// kernel: causal_self_attention.3
= control target key start
LH: loop header
LB: loop body
LE: loop exit
PB: predicated region body
PF: predicated region fallthrough
CT: control target
= control target key end

     0   :  { %8 = vsyncpa [#allocation4], 0  ;;  %s311_s0 = inlined_call_operand.hbm [shape: f32[16,32], index: 0, kind: input, shape index: {}]   ;;  %s312_s1 = inlined_call_operand.hbm [shape: f32[32,96], index: 1, kind: input, shape index: {}]   ;;  %s313_s2 = inlined_call_operand.vmem [shape: f32[1,96], index: 2, kind: input, shape index: {}]   ;;  %s314_s3 = inlined_call_operand.vmem [shape: f32[16,96], index: 3, kind: output, shape index: {}]  }
   0x1   :  { %9 = vsyncpa [#allocation6], 0  ;;  %s247_s12 = smov [#allocation3]   ;;  %s199_s16 = scalar_lea.hbm %s311_s0, 256 }
   0x2   :  { %s15_s13 = sshll.u32 %s247_s12, 4  ;;  %p200_p0 = scmp.ne.s32.totalorder %s311_s0, %s199_s16  ;;  %s16_s13 = int_to_ptr.vmem [resolvable:$true] %s15_s13 }
   0x3   :  { %p203_p1 = scmp.lt.u32.totalorder %s199_s16, %s311_s0 }
   0x5   :  { %p205_p2 = pnand %p203_p1, %p200_p0 }
   0x7   :  { %208 = shalt.err (!%p205_p2)
}
   0x8   :  { %s209_s21 = scalar_lea.vmem %s16_s13, 256  ;;  %p214_p4 = scmp.lt.s32.totalorder %s16_s13, %s16_s13 }
   0x9   :  { %p210_p3 = scmp.ne.s32.totalorder %s16_s13, %s209_s21  ;;  %p215_p5 = scmp.lt.s32.totalorder %s209_s21, %s209_s21 }
   0xb   :  { %p216_p6 = por %p215_p5, %p214_p4 }
   0xd   :  { %p217_p7 = pnand %p216_p6, %p210_p3 }
   0xf   :  { %220 = shalt.err (!%p217_p7)
}
  0x10   :  { %s248_s22 = smov 128   ;;  %s249_s23 = smov 8  }
  0x11   :  { %21 = dma.hbm_to_vmem [thread:$0]  %s311_s0, 256, %s16_s13, [#allocation4], %s248_s22, %s248_s22, %s249_s23  }
  0x12   :  { %s250_s26 = smov [#allocation5]   ;;  %s221_s30 = scalar_lea.hbm %s312_s1, 512 }
  0x13   :  { %s27_s27 = sshll.u32 %s250_s26, 4  ;;  %p222_p8 = scmp.ne.s32.totalorder %s312_s1, %s221_s30  ;;  %s28_s27 = int_to_ptr.vmem [resolvable:$true] %s27_s27 }
  0x14   :  { %p225_p9 = scmp.lt.u32.totalorder %s221_s30, %s312_s1 }
  0x16   :  { %p227_p10 = pnand %p225_p9, %p222_p8 }
  0x18   :  { %230 = shalt.err (!%p227_p10)
}
  0x19   :  { %s231_s8 = scalar_lea.vmem %s28_s27, 512  ;;  %p236_p12 = scmp.lt.s32.totalorder %s28_s27, %s28_s27 }
  0x1a   :  { %p232_p11 = scmp.ne.s32.totalorder %s28_s27, %s231_s8  ;;  %p237_p13 = scmp.lt.s32.totalorder %s231_s8, %s231_s8 }
  0x1c   :  { %p238_p0 = por %p237_p13, %p236_p12 }
  0x1e   :  { %p239_p1 = pnand %p238_p0, %p232_p11 }
  0x20   :  { %242 = shalt.err (!%p239_p1)
}
  0x21   :  { %33 = dma.hbm_to_vmem [thread:$0]  %s312_s1, 512, %s28_s27, [#allocation6], %s248_s22, %s248_s22, %s249_s23  }
  0x22   :  { %243 = dma.done.wait [#allocation4], 256  }
  0x23   :  { %244 = vsyncadd [#allocation4], 4294967040 }
  0x24   :  { %245 = dma.done.wait [#allocation6], 512  }
  0x25   :  { %246 = vsyncadd [#allocation6], 4294966784  ;;  %vm46_vm0 = vcmask 785408   ;;  %v251_v0 = vmov 0.0   ;;  %vm57_vm1 = vcmask 261120   ;;  %v53_v1 = vld [vmem:[#allocation5] sm:$0xff] }
  0x26   :  { %48 = vst.msk [vmem:[#allocation2 + $0x8] sm:$0xff] %vm46_vm0, %v251_v0  ;;  %47 = vst.msk [vmem:[#allocation2] sm:$0xff] %vm46_vm0, %v251_v0  ;;  %v54_v2 = vld [vmem:[#allocation5 + $0x8] sm:$0xff]  ;;  %v55_v3 = vld [vmem:[#allocation5 + $0x10] sm:$0xff] }
  0x27   :  { %v186_v4 = vpack.c.bf16 %v54_v2, %v53_v1  ;;  %v56_v5 = vld [vmem:[#allocation5 + $0x18] sm:$0xff]  ;;  %v51_v6 = vld [vmem:[#allocation3] sm:$0xff]  ;;  %v168_v15 = vld [vmem:[%s313_s2] ss:$0 sm:$0xff] }
  0x28   :  { %v190_v7 = vpack.c.bf16 %v56_v5, %v55_v3  ;;  %183 = vmatprep.mubr.msk.f32.mxu0 %vm57_vm1, %v51_v6  ;;  %v52_v8 = vld [vmem:[#allocation3 + $0x8] sm:$0xff] }
  0x29   :  { %187 = vmatprep.subr.bf16.mxu0 %v186_v4 }
  0x2a   :  { %189 = vmatpush3.bf16.msra.mxu0 %v186_v4 }
  0x2b   :  { %191 = vmatprep.subr.bf16.mxu0 %v190_v7 }
  0x2d   :  { %v50_v9 = vld [vmem:[#allocation2 + $0x8] sm:$0xff]  ;;  %v49_v10 = vld [vmem:[#allocation2] sm:$0xff] }
  0x2e   :  { %193 = vmatpush3.bf16.msra.mxu0 %v190_v7 }
  0x31   :  { %184 = vmatmul.mubr.msk.f32.vlgmr.msra.gmra.mrb[0].mxu0 %vm57_vm1, %v52_v8 }
 0x104   :  { %v185_v11 = vpop.f32.mrb[0].mxu0 }
 0x105   :  { %v140_v12 = vadd.f32 %v185_v11, %v50_v9  ;;  %v130_v13 = vpop.f32.mrb[1].mxu0 }
 0x106   :  { %v139_v14 = vadd.f32 %v130_v13, %v49_v10 }
 0x107   :  { %143 = vst.msk [vmem:[#allocation2 + $0x8] sm:$0xff] %vm46_vm0, %v140_v12 }
 0x108   :  { %142 = vst.msk [vmem:[#allocation2] sm:$0xff] %vm46_vm0, %v139_v14 }
 0x10e   :  { %v148_v16 = vld [vmem:[#allocation2 + $0x8] sm:$0xff] }
 0x10f   :  { %v157_v17 = vadd.f32 %v168_v15, %v148_v16  ;;  %v147_v18 = vld [vmem:[#allocation2] sm:$0xff] }
 0x110   :  { %v156_v19 = vadd.f32 %v168_v15, %v147_v18 }
 0x111   :  { %159 = vst.msk [vmem:[%s314_s3 + $0x8] sm:$0xff] %vm46_vm0, %v157_v17 }
 0x112   :  { %158 = vst.msk [vmem:[%s314_s3] sm:$0xff] %vm46_vm0, %v156_v19 }
 0x113   :  { %164 = vsyncpa [#allocation4], 1 }
 0x114   :  { %165 = vsyncpa [#allocation6], 1 }

// kernel: causal_self_attention.5
= control target key start
LH: loop header
LB: loop body
LE: loop exit
PB: predicated region body
PF: predicated region fallthrough
CT: control target
= control target key end

     0   :  { %vm19_vm0 = vcmask 261120   ;;  %v204_v6 = vmov 0.0   ;;  %s269_s0 = inlined_call_operand.vmem [shape: f32[16,32], index: 0, kind: input, shape index: {}]   ;;  %s270_s1 = inlined_call_operand.vmem [shape: f32[32,32], index: 1, kind: input, shape index: {}]   ;;  %s271_s2 = inlined_call_operand.vmem [shape: f32[1,32], index: 2, kind: input, shape index: {}]   ;;  %s272_s3 = inlined_call_operand.hbm [shape: f32[16,32], index: 3, kind: output, shape index: {}]  }
   0x1   :  { %v26_v0 = vld [vmem:[%s270_s1] sm:$0xff]  ;;  %v27_v1 = vld [vmem:[%s270_s1 + $0x8] sm:$0xff]  ;;  %v28_v2 = vld [vmem:[%s270_s1 + $0x10] sm:$0xff]  ;;  %21 = vst.msk [vmem:[#allocation2 + $0x8] sm:$0xff] %vm19_vm0, %v204_v6 }
   0x2   :  { %v168_v3 = vpack.c.bf16 %v27_v1, %v26_v0  ;;  %v29_v4 = vld [vmem:[%s270_s1 + $0x18] sm:$0xff]  ;;  %v24_v5 = vld [vmem:[%s269_s0] sm:$0xff]  ;;  %20 = vst.msk [vmem:[#allocation2] sm:$0xff] %vm19_vm0, %v204_v6 }
   0x3   :  { %v172_v7 = vpack.c.bf16 %v29_v4, %v28_v2  ;;  %165 = vmatprep.mubr.msk.f32.mxu0 %vm19_vm0, %v24_v5 }
   0x4   :  { %8 = vsyncpa [#allocation4], 0  ;;  %169 = vmatprep.subr.bf16.mxu0 %v168_v3  ;;  %v25_v8 = vld [vmem:[%s269_s0 + $0x8] sm:$0xff]  ;;  %v150_v15 = vld [vmem:[%s271_s2] ss:$0 sm:$0xff]  ;;  %s205_s25 = smov [#allocation3]  }
   0x5   :  { %171 = vmatpush3.bf16.msra.mxu0 %v168_v3  ;;  %s137_s26 = sshll.u32 %s205_s25, 4  ;;  %s138_s26 = int_to_ptr.vmem [resolvable:$true] %s137_s26 }
   0x6   :  { %173 = vmatprep.subr.bf16.mxu0 %v172_v7  ;;  %s180_s0 = scalar_lea.vmem %s138_s26, 256  ;;  %p185_p1 = scmp.lt.s32.totalorder %s138_s26, %s138_s26 }
   0x7   :  { %p181_p0 = scmp.ne.s32.totalorder %s138_s26, %s180_s0  ;;  %p186_p2 = scmp.lt.s32.totalorder %s180_s0, %s180_s0 }
   0x8   :  { %v23_v9 = vld [vmem:[#allocation2 + $0x8] sm:$0xff] }
   0x9   :  { %175 = vmatpush3.bf16.msra.mxu0 %v172_v7  ;;  %v22_v10 = vld [vmem:[#allocation2] sm:$0xff]  ;;  %p187_p3 = por %p186_p2, %p185_p1 }
   0xb   :  { %p188_p4 = pnand %p187_p3, %p181_p0 }
   0xc   :  { %166 = vmatmul.mubr.msk.f32.vlgmr.msra.gmra.mrb[0].mxu0 %vm19_vm0, %v25_v8 }
  0xdf   :  { %v167_v11 = vpop.f32.mrb[0].mxu0 }
  0xe0   :  { %v113_v12 = vadd.f32 %v167_v11, %v23_v9  ;;  %v103_v13 = vpop.f32.mrb[1].mxu0 }
  0xe1   :  { %v112_v14 = vadd.f32 %v103_v13, %v22_v10 }
  0xe2   :  { %115 = vst.msk [vmem:[#allocation2 + $0x8] sm:$0xff] %vm19_vm0, %v113_v12 }
  0xe3   :  { %114 = vst.msk [vmem:[#allocation2] sm:$0xff] %vm19_vm0, %v112_v14 }
  0xe9   :  { %v120_v16 = vld [vmem:[#allocation2 + $0x8] sm:$0xff] }
  0xea   :  { %v119_v17 = vld [vmem:[#allocation2] sm:$0xff]  ;;  %v129_v18 = vadd.f32 %v150_v15, %v120_v16 }
  0xeb   :  { %v128_v19 = vadd.f32 %v150_v15, %v119_v17 }
  0xec   :  { %131 = vst.msk [vmem:[#allocation3 + $0x8] sm:$0xff] %vm19_vm0, %v129_v18 }
  0xed   :  { %130 = vst.msk [vmem:[#allocation3] sm:$0xff] %vm19_vm0, %v128_v19 }
  0xee   :  { %191 = shalt.err (!%p188_p4)
}
  0xef   :  { %s192_s28 = scalar_lea.hbm %s272_s3, 256 }
  0xf0   :  { %p193_p5 = scmp.ne.s32.totalorder %s272_s3, %s192_s28  ;;  %p196_p6 = scmp.lt.u32.totalorder %s192_s28, %s272_s3 }
  0xf2   :  { %p198_p7 = pnand %p196_p6, %p193_p5 }
  0xf4   :  { %201 = shalt.err (!%p198_p7)
}
  0xf5   :  { %s206_s6 = smov 128   ;;  %s207_s7 = smov 8  }
  0xf6   :  { %143 = dma.vmem_to_hbm [thread:$0]  %s138_s26, 256, %s272_s3, [#allocation4], %s206_s6, %s206_s6, %s207_s7  }
  0xf7   :  { %202 = dma.done.wait [#allocation4], 256  }
  0xf8   :  { %203 = vsyncadd [#allocation4], 4294967040 }
  0xf9   :  { %147 = vsyncpa [#allocation4], 1 }

// kernel: causal_self_attention.4
= control target key start
LH: loop header
LB: loop body
LE: loop exit
PB: predicated region body
PF: predicated region fallthrough
CT: control target
= control target key end

     0   :  { %s1900_s12 = smov 0   ;;  %s1902_s13 = smov 0   ;;  %s2381_s0 = inlined_call_operand.vmem [shape: f32[2,8,3,4,8], index: 0, kind: input, shape index: {}, may-alias: {0,1,2}]   ;;  %s2382_s1 = inlined_call_operand.vmem [shape: f32[2,8,3,4,8], index: 1, kind: input, shape index: {}, may-alias: {0,1,2}]   ;;  %s2383_s2 = inlined_call_operand.vmem [shape: f32[2,8,3,4,8], index: 2, kind: input, shape index: {}, may-alias: {0,1,2}]   ;;  %s2384_s3 = inlined_call_operand.vmem [shape: f32[2,8,32], index: 3, kind: output, shape index: {}]  }
   0x1   :  { %s1904_s14 = smov 0   ;;  %s1906_s15 = smov 0  }
   0x2   :  { %s1908_s16 = smov 0  }
   0x3 LB: > { %s32_s17 = sadd.s32 1, %s1867_s15  ;;  %p48_p1 = scmp.ne.s32.totalorder %s1859_s13, %s1855_s12  ;;  %s1871_s16 = sphi %s1908_s16, %s13_s16   ;;  %s1867_s15 = sphi %s1906_s15, %s2389_s15   ;;  %s1863_s14 = sphi %s1904_s14, %s2388_s14   ;;  %s1859_s13 = sphi %s1902_s13, %s2387_s13   ;;  %s1855_s12 = sphi %s1900_s12, %s2386_s12  }
   0x4   : > { %p34_p0 = scmp.ge.s32.totalorder %s32_s17, 2  ;;  %p49_p2 = scmp.eq.s32.totalorder %s1871_s16, 0 }
   0x5   : > { %s41_s20 = sadd.s32 1, %s1859_s13  ;;  %p1661_p5 = scmp.ge.s32.totalorder %s1871_s16, 2 }
   0x6   : > { %s2391_s17 = smov (%p34_p0, %s32_s17), 0  ;;  %p1931_p3 = por %p49_p2, %p48_p1 }
   0x7   : > { %s36_s19 = ssub.s32 %s1867_s15, %s2391_s17  ;;  %158 = sbr.rel (%p1661_p5) target bundleno = 44 (0x2c), region = 16 }
   0x8   : > { %p39_p4 = scmp.eq.s32.totalorder %s36_s19, 0 }
   0xa   : > { %s1939_s21 = scalar_select %p39_p4, %s1859_s13, %s41_s20  }
   0xe   : > { %161 = sbr.rel (!%p1931_p3) target bundleno = 24 (0x18), region = 20  ;;  %s163_s22 = sand.u32 (%p1931_p3), 1, %s1859_s13  }
   0xf   : > { %s1759_s23 = smul.u32 (%p1931_p3), 96, %s1867_s15  ;;  %s1662_s24 = sshll.u32 (%p1931_p3), %s163_s22, 5 }
  0x10   : > { %s165_s28 = scalar_lea.vmem (%p1931_p3), [#allocation5], %s1662_s24 }
  0x11   : > { %s171_s27 = scalar_lea.vmem (%p1931_p3), %s2381_s0, %s1759_s23 }
  0x12   : > { %v187_v0 = vld [vmem:[%s171_s27] sm:$0xf] (%p1931_p3)  ;;  %v189_v1 = vld [vmem:[%s171_s27 + $0xc] sm:$0xf] (%p1931_p3)  ;;  %v191_v2 = vld [vmem:[%s171_s27 + $0x18] sm:$0xf] (%p1931_p3) }
  0x13   : > { %188 = vst [vmem:[%s165_s28] sm:$0xf] (%p1931_p3), %v187_v0  ;;  %190 = vst [vmem:[%s165_s28 + $0x4] sm:$0xf] (%p1931_p3), %v189_v1  ;;  %v193_v3 = vld [vmem:[%s171_s27 + $0x24] sm:$0xf] (%p1931_p3) }
  0x14   : > { %192 = vst [vmem:[%s165_s28 + $0x8] sm:$0xf] (%p1931_p3), %v191_v2  ;;  %v195_v4 = vld [vmem:[%s171_s27 + $0x30] sm:$0xf] (%p1931_p3)  ;;  %v197_v5 = vld [vmem:[%s171_s27 + $0x3c] sm:$0xf] (%p1931_p3) }
  0x15   : > { %194 = vst [vmem:[%s165_s28 + $0xc] sm:$0xf] %v193_v3  ;;  %196 = vst [vmem:[%s165_s28 + $0x10] sm:$0xf] %v195_v4  ;;  %v199_v6 = vld [vmem:[%s171_s27 + $0x48] sm:$0xf] }
  0x16   : > { %198 = vst [vmem:[%s165_s28 + $0x14] sm:$0xf] %v197_v5  ;;  %v201_v7 = vld [vmem:[%s171_s27 + $0x54] sm:$0xf]  ;;  %200 = vst [vmem:[%s165_s28 + $0x18] sm:$0xf] %v199_v6 }
  0x17   : > { %202 = vst [vmem:[%s165_s28 + $0x1c] sm:$0xf] %v201_v7 }
  0x18 PF: > { %241 = sbr.rel (!%p1931_p3) target bundleno = 34 (0x22), region = 61  ;;  %s243_s29 = sand.u32 (%p1931_p3), 1, %s1859_s13  }
  0x19   : > { %s1665_s30 = smul.u32 (%p1931_p3), 96, %s1867_s15  ;;  %s1664_s4 = sshll.u32 (%p1931_p3), %s243_s29, 5 }
  0x1a   : > { %s245_s8 = scalar_lea.vmem (%p1931_p3), [#allocation6], %s1664_s4 }
  0x1b   : > { %s1569_s7 = scalar_lea.vmem (%p1931_p3), %s2382_s1, %s1665_s30 }
  0x1c   : > { %v1666_v8 = vld [vmem:[%s1569_s7 + $0x4] sm:$0xf] (%p1931_p3)  ;;  %v1667_v9 = vld [vmem:[%s1569_s7 + $0x10] sm:$0xf] (%p1931_p3)  ;;  %v1668_v10 = vld [vmem:[%s1569_s7 + $0x1c] sm:$0xf] (%p1931_p3) }
  0x1d   : > { %269 = vst [vmem:[%s245_s8] sm:$0xf] (%p1931_p3), %v1666_v8  ;;  %271 = vst [vmem:[%s245_s8 + $0x4] sm:$0xf] (%p1931_p3), %v1667_v9  ;;  %v1669_v11 = vld [vmem:[%s1569_s7 + $0x28] sm:$0xf] (%p1931_p3) }
  0x1e   : > { %273 = vst [vmem:[%s245_s8 + $0x8] sm:$0xf] (%p1931_p3), %v1668_v10  ;;  %v1670_v12 = vld [vmem:[%s1569_s7 + $0x34] sm:$0xf] (%p1931_p3)  ;;  %v1671_v13 = vld [vmem:[%s1569_s7 + $0x40] sm:$0xf] (%p1931_p3) }
  0x1f   : > { %275 = vst [vmem:[%s245_s8 + $0xc] sm:$0xf] %v1669_v11  ;;  %277 = vst [vmem:[%s245_s8 + $0x10] sm:$0xf] %v1670_v12  ;;  %v1672_v14 = vld [vmem:[%s1569_s7 + $0x4c] sm:$0xf] }
  0x20   : > { %279 = vst [vmem:[%s245_s8 + $0x14] sm:$0xf] %v1671_v13  ;;  %v1673_v15 = vld [vmem:[%s1569_s7 + $0x58] sm:$0xf]  ;;  %281 = vst [vmem:[%s245_s8 + $0x18] sm:$0xf] %v1672_v14 }
  0x21   : > { %283 = vst [vmem:[%s245_s8 + $0x1c] sm:$0xf] %v1673_v15 }
  0x22 PF: > { %322 = sbr.rel (!%p1931_p3) target bundleno = 44 (0x2c), region = 102  ;;  %s324_s9 = sand.u32 (%p1931_p3), 1, %s1859_s13  }
  0x23   : > { %s1675_s10 = smul.u32 (%p1931_p3), 96, %s1867_s15  ;;  %s1674_s11 = sshll.u32 (%p1931_p3), %s324_s9, 5 }
  0x24   : > { %s326_s23 = scalar_lea.vmem (%p1931_p3), [#allocation7], %s1674_s11 }
  0x25   : > { %s1577_s22 = scalar_lea.vmem (%p1931_p3), %s2383_s2, %s1675_s10 }
  0x26   : > { %v1676_v16 = vld [vmem:[%s1577_s22 + $0x8] sm:$0xf] (%p1931_p3)  ;;  %v1677_v17 = vld [vmem:[%s1577_s22 + $0x14] sm:$0xf] (%p1931_p3)  ;;  %v1678_v18 = vld [vmem:[%s1577_s22 + $0x20] sm:$0xf] (%p1931_p3) }
  0x27   : > { %350 = vst [vmem:[%s326_s23] sm:$0xf] (%p1931_p3), %v1676_v16  ;;  %352 = vst [vmem:[%s326_s23 + $0x4] sm:$0xf] (%p1931_p3), %v1677_v17  ;;  %v1679_v19 = vld [vmem:[%s1577_s22 + $0x2c] sm:$0xf] (%p1931_p3) }
  0x28   : > { %354 = vst [vmem:[%s326_s23 + $0x8] sm:$0xf] (%p1931_p3), %v1678_v18  ;;  %v1680_v20 = vld [vmem:[%s1577_s22 + $0x38] sm:$0xf] (%p1931_p3)  ;;  %v1681_v21 = vld [vmem:[%s1577_s22 + $0x44] sm:$0xf] (%p1931_p3) }
  0x29   : > { %356 = vst [vmem:[%s326_s23 + $0xc] sm:$0xf] %v1679_v19  ;;  %358 = vst [vmem:[%s326_s23 + $0x10] sm:$0xf] %v1680_v20  ;;  %v1682_v22 = vld [vmem:[%s1577_s22 + $0x50] sm:$0xf] }
  0x2a   : > { %360 = vst [vmem:[%s326_s23 + $0x14] sm:$0xf] %v1681_v21  ;;  %v1683_v23 = vld [vmem:[%s1577_s22 + $0x5c] sm:$0xf]  ;;  %362 = vst [vmem:[%s326_s23 + $0x18] sm:$0xf] %v1682_v22 }
  0x2b   : > { %364 = vst [vmem:[%s326_s23 + $0x1c] sm:$0xf] %v1683_v23 }
  0x2c PF: > { %p1684_p6 = scmp.ge.s32.totalorder %s1871_s16, 1  ;;  %p402_p7 = scmp.lt.s32.totalorder %s1871_s16, 3 }
  0x2e   : > { %p403_p8 = pnand %p1684_p6, %p402_p7 }
  0x2f   : > { %s409_s18 = sand.u32 (!%p403_p8), 1, %s1855_s12   ;;  %vm479_vm0 = vcmask (!%p403_p8), 64512   ;;  %v1873_v24 = vmov (!%p403_p8), 0.0   ;;  %vm532_vm1 = vcmask (!%p403_p8), 1041409   ;;  %vm535_vm2 = vcmask (!%p403_p8), 1042434   ;;  %s1877_s27 = smov (!%p403_p8), 8  }
  0x30   : > { %406 = sbr.rel (%p403_p8) target bundleno = 1494 (0x5d6), region = 143  ;;  %1719 = vmatprep.subr.mxu0 (!%p403_p8), %v1873_v24  ;;  %s1967_s24 = sshll.u32 (!%p403_p8), %s409_s18, 5  ;;  %480 = vst.msk [vmem:[#allocation4] sm:$0xff] (!%p403_p8), %vm479_vm0, %v1873_v24  ;;  %481 = vst.msk [vmem:[#allocation4 + $0x8] sm:$0xff] (!%p403_p8), %vm479_vm0, %v1873_v24  ;;  %1724 = vmatprep.subr.mxu1 (!%p403_p8), %v1873_v24  ;;  %vm538_vm3 = vcmask (!%p403_p8), 1043459   ;;  %vm541_vm4 = vcmask (!%p403_p8), 1044484   ;;  %v512_v6 = vlaneseq (!%p403_p8) }
  0x31   : > { %482 = vst.msk [vmem:[#allocation4 + $0x10] sm:$0xff] (!%p403_p8), %vm479_vm0, %v1873_v24  ;;  %483 = vst.msk [vmem:[#allocation4 + $0x18] sm:$0xff] (!%p403_p8), %vm479_vm0, %v1873_v24  ;;  %vm544_vm5 = vcmask (!%p403_p8), 1045509   ;;  %s418_s12 = scalar_lea.vmem (!%p403_p8), [#allocation6], %s1967_s24  ;;  %vm1874_vm6 = vmmov (!%p403_p8), 0   ;;  %vm547_vm7 = vcmask (!%p403_p8), 1046534  }
  0x32   : > { %v1979_v25 = vld [vmem:[%s418_s12] sm:$0xf] (!%p403_p8)  ;;  %v1981_v26 = vld [vmem:[%s418_s12 + $0x4] sm:$0xf] (!%p403_p8)  ;;  %v1983_v27 = vld [vmem:[%s418_s12 + $0x8] sm:$0xf] (!%p403_p8)  ;;  %1721 = vmatprep.mubr.msk.f32.mxu0 (!%p403_p8), %vm1874_vm6, %v1873_v24  ;;  %1726 = vmatprep.mubr.msk.f32.mxu1 (!%p403_p8), %vm1874_vm6, %v1873_v24 }
  0x33   : > { %v1989_v28 = vld [vmem:[%s418_s12 + $0xc] sm:$0xf] (!%p403_p8)  ;;  %v1991_v29 = vld [vmem:[%s418_s12 + $0x10] sm:$0xf] (!%p403_p8)  ;;  %v1993_v30 = vld [vmem:[%s418_s12 + $0x14] sm:$0xf] (!%p403_p8) }
  0x34   : > { %v1995_v31 = vld [vmem:[%s418_s12 + $0x18] sm:$0xf] (!%p403_p8)  ;;  %v1997_v32 = vld [vmem:[%s418_s12 + $0x1c] sm:$0xf] (!%p403_p8)  ;;  %v560_v33 = vrot.slane (!%p403_p8), %v1981_v26, 7  ;;  %v562_v34 = vrot.slane (!%p403_p8), %v1983_v27, 6 }
  0x35   : > { %vm550_vm8 = vcmask (!%p403_p8), 1047559   ;;  %v564_v35 = vrot.slane (!%p403_p8), %v1989_v28, 5  ;;  %v566_v36 = vrot.slane (!%p403_p8), %v1991_v29, 4  ;;  %v568_v38 = vrot.slane (!%p403_p8), %v1993_v30, 3  ;;  %s411_s25 = scalar_lea.vmem (!%p403_p8), [#allocation5], %s1967_s24  ;;  %s425_s26 = scalar_lea.vmem (!%p403_p8), [#allocation7], %s1967_s24 }
  0x36   : > { %v561_v37 = vsel (!%p403_p8), %vm532_vm1, %v560_v33, %v1979_v25  ;;  %v570_v39 = vrot.slane (!%p403_p8), %v1995_v31, 2  ;;  %v2008_v40 = vld [vmem:[%s411_s25] sm:$0xf] (!%p403_p8)  ;;  %v2010_v41 = vld [vmem:[%s411_s25 + $0x4] sm:$0xf] (!%p403_p8)  ;;  %v572_v43 = vrot.slane (!%p403_p8), %v1997_v32, 1 }
  0x37   : > { %v563_v42 = vsel %vm535_vm2, %v562_v34, %v561_v37  ;;  %v2014_v44 = vld [vmem:[%s411_s25 + $0x8] sm:$0xf]  ;;  %v2016_v45 = vld [vmem:[%s411_s25 + $0xc] sm:$0xf]  ;;  %v531_v46 = vrot.slane %v2010_v41, 7  ;;  %vm470_vm9 = vcmask 7168  }
  0x38   : > { %v565_v47 = vsel %vm538_vm3, %v564_v35, %v563_v42  ;;  %v2020_v48 = vld [vmem:[%s411_s25 + $0x10] sm:$0xf]  ;;  %v2022_v49 = vld [vmem:[%s411_s25 + $0x14] sm:$0xf]  ;;  %v2024_v50 = vld [vmem:[%s411_s25 + $0x18] sm:$0xf] }
  0x39   : > { %v567_v51 = vsel %vm541_vm4, %v566_v36, %v565_v47  ;;  %v2027_v52 = vld [vmem:[%s411_s25 + $0x1c] sm:$0xf]  ;;  %v533_v53 = vsel %vm532_vm1, %v531_v46, %v2008_v40  ;;  %v534_v54 = vrot.slane %v2014_v44, 6  ;;  %v537_v55 = vrot.slane %v2016_v45, 5  ;;  %475 = vst.msk [vmem:[#allocation3] sm:$0xff] %vm470_vm9, %v1873_v24  ;;  %476 = vst.msk [vmem:[#allocation3 + $0x8] sm:$0xff] %vm470_vm9, %v1873_v24 }
  0x3a   : > { %v569_v56 = vsel %vm544_vm5, %v568_v38, %v567_v51  ;;  %v540_v57 = vrot.slane %v2020_v48, 4  ;;  %v543_v58 = vrot.slane %v2022_v49, 3  ;;  %v546_v61 = vrot.slane %v2024_v50, 2  ;;  %477 = vst.msk [vmem:[#allocation3 + $0x10] sm:$0xff] %vm470_vm9, %v1873_v24  ;;  %478 = vst.msk [vmem:[#allocation3 + $0x18] sm:$0xff] %vm470_vm9, %v1873_v24  ;;  %s1878_s28 = smov 16  }
  0x3b   : > { %v571_v59 = vsel %vm547_vm7, %v570_v39, %v569_v56  ;;  %v536_v60 = vsel %vm535_vm2, %v534_v54, %v533_v53  ;;  %v549_v0 = vrot.slane %v2027_v52, 1  ;;  %v1875_v5 = vmov -inf   ;;  %v2079_v18 = vld [vmem:[%s425_s26 + $0x4] sm:$0xf]  ;;  %v2086_v20 = vld [vmem:[%s425_s26 + $0x8] sm:$0xf] }
  0x3c   : > { %v573_v62 = vsel %vm550_vm8, %v572_v43, %v571_v59  ;;  %v539_v63 = vsel %vm538_vm3, %v537_v55, %v536_v60  ;;  %471 = vst.msk [vmem:[#allocation2] sm:$0xff] %vm470_vm9, %v1875_v5  ;;  %472 = vst.msk [vmem:[#allocation2 + $0x8] sm:$0xff] %vm470_vm9, %v1875_v5  ;;  %v2063_v7 = vshrl.u32 %v512_v6, 7  ;;  %v2065_v8 = vand.u32 127, %v512_v6  ;;  %v2089_v22 = vld [vmem:[%s425_s26] sm:$0xf] }
  0x3d   : > { %1720 = vmatpush3.xpose.msk.msra.mxu0 %vm479_vm0, %v573_v62  ;;  %v542_v1 = vsel %vm541_vm4, %v540_v57, %v539_v63  ;;  %473 = vst.msk [vmem:[#allocation2 + $0x10] sm:$0xff] %vm470_vm9, %v1875_v5  ;;  %474 = vst.msk [vmem:[#allocation2 + $0x18] sm:$0xff] %vm470_vm9, %v1875_v5  ;;  %v1876_v14 = vmov 0   ;;  %v690_v21 = vrot.slane %v2079_v18, 7  ;;  %v2091_v23 = vld [vmem:[%s425_s26 + $0xc] sm:$0xf] }
  0x3e   : > { %v545_v2 = vsel %vm544_vm5, %v543_v58, %v542_v1  ;;  %1734 = vmatprep.subr.mxu0 %v1873_v24  ;;  %vm522_vm10 = vcmp.le.s32.totalorder %v2065_v8, %v2063_v7  ;;  %1807 = vset.pattern.permute.xlu0 %v1876_v14  ;;  %v692_v33 = vrot.slane %v2086_v20, 6  ;;  %v2094_v34 = vld [vmem:[%s425_s26 + $0x10] sm:$0xf]  ;;  %v694_v36 = vrot.slane %v2091_v23, 5  ;;  %v2099_v37 = vld [vmem:[%s425_s26 + $0x14] sm:$0xf] }
  0x3f   : > { %v548_v3 = vsel %vm547_vm7, %v546_v61, %v545_v2  ;;  %1808 = vset.pattern.permute.xlu1 %v1876_v14  ;;  %v691_v35 = vsel %vm532_vm1, %v690_v21, %v2089_v22  ;;  %v696_v39 = vrot.slane %v2094_v34, 4  ;;  %v2103_v42 = vld [vmem:[%s425_s26 + $0x18] sm:$0xf]  ;;  %v2105_v43 = vld [vmem:[%s425_s26 + $0x1c] sm:$0xf]  ;;  %v698_v47 = vrot.slane %v2099_v37, 3 }
  0x40   : > { %v551_v4 = vsel %vm550_vm8, %v549_v0, %v548_v3  ;;  %v693_v38 = vsel %vm535_vm2, %v692_v33, %v691_v35  ;;  %v700_v53 = vrot.slane %v2103_v42, 2  ;;  %v702_v54 = vrot.slane %v2105_v43, 1  ;;  %s1879_s29 = smov 24   ;;  %p459_p9 = scmp.lt.s32.totalorder %s1863_s14, 1 }
  0x41   : > { %1722 = vmatmul.mubr.msk.f32.vlgmr.msra.gmra.mrb[0].mxu0 %vm479_vm0, %v551_v4  ;;  %v695_v46 = vsel %vm538_vm3, %v694_v36, %v693_v38  ;;  %v795_v58 = vrot.slane %v1979_v25, 1  ;;  %v797_v59 = vrot.slane %v1983_v27, 7  ;;  %v1023_v60 = vrot.slane %v1979_v25, 2 }
  0x42   : > { %1736 = vmatprep.mubr.msk.f32.mxu0 %vm1874_vm6, %v1873_v24  ;;  %v697_v51 = vsel %vm541_vm4, %v696_v39, %v695_v46  ;;  %v781_v62 = vrot.slane %v2008_v40, 1  ;;  %v1024_v63 = vrot.slane %v1981_v26, 1  ;;  %v799_v0 = vrot.slane %v1989_v28, 6  ;;  %s2393_s14 = smov (!%p459_p9, %s1863_s14), 1 }
  0x43   : > { %v2073_v15 = vld [vmem:[#allocation2] sm:$0xff]  ;;  %v699_v55 = vsel %vm544_vm5, %v698_v47, %v697_v51  ;;  %v796_v61 = vsel %vm532_vm1, %v1981_v26, %v795_v58  ;;  %v783_v2 = vrot.slane %v2014_v44, 7  ;;  %v1009_v3 = vrot.slane %v2008_v40, 2  ;;  %s1688_s30 = sshll.u32 %s2393_s14, 3 }
  0x44   : > { %v701_v56 = vsel %vm547_vm7, %v700_v53, %v699_v55  ;;  %v798_v1 = vsel %vm535_vm2, %v797_v59, %v796_v61  ;;  %v1010_v4 = vrot.slane %v2010_v41, 1  ;;  %v782_v5 = vsel %vm532_vm1, %v2010_v41, %v781_v62  ;;  %s465_s6 = scalar_lea.vmem %s2384_s3, %s1688_s30 }
  0x45   : > { %v703_v57 = vsel %vm550_vm8, %v702_v54, %v701_v56  ;;  %v1025_v6 = vsel %vm532_vm1, %v1024_v63, %v1023_v60  ;;  %v785_v21 = vrot.slane %v2016_v45, 6  ;;  %v784_v33 = vsel %vm535_vm2, %v783_v2, %v782_v5 }
  0x46   : > { %1725 = vmatpush3.msra.mxu1 %v703_v57  ;;  %v1026_v35 = vsel %vm535_vm2, %v1983_v27, %v1025_v6  ;;  %v1027_v36 = vrot.slane %v1989_v28, 7  ;;  %v1011_v38 = vsel %vm532_vm1, %v1010_v4, %v1009_v3  ;;  %v1254_v39 = vrot.slane %v1983_v27, 1 }
  0x47   : > { %1729 = vmatprep.subr.mxu1 %v1873_v24  ;;  %v1237_v46 = vrot.slane %v2008_v40, 3  ;;  %v803_v47 = vrot.slane %v1993_v30, 4  ;;  %v787_v51 = vrot.slane %v2020_v48, 5  ;;  %v786_v54 = vsel %vm538_vm3, %v785_v21, %v784_v33 }
  0x48   : > { %v1029_v55 = vrot.slane %v1991_v29, 6  ;;  %v1013_v56 = vrot.slane %v2016_v45, 7  ;;  %v1028_v27 = vsel %vm538_vm3, %v1027_v36, %v1026_v35  ;;  %v1012_v40 = vsel %vm535_vm2, %v2014_v44, %v1011_v38 }
  0x49   : > { %v805_v57 = vrot.slane %v1995_v31, 3  ;;  %v789_v58 = vrot.slane %v2022_v49, 4  ;;  %v788_v62 = vsel %vm541_vm4, %v787_v51, %v786_v54  ;;  %v1031_v63 = vrot.slane %v1993_v30, 5 }
  0x4a   : > { %v1257_v2 = vrot.slane %v1991_v29, 7  ;;  %v807_v3 = vrot.slane %v1997_v32, 2  ;;  %v791_v4 = vrot.slane %v2024_v50, 3  ;;  %v1243_v21 = vrot.slane %v2020_v48, 7 }
  0x4b   : > { %v1263_v54 = vrot.slane %v1997_v32, 4  ;;  %vm1525_vm11 = vcmask 130048   ;;  %vm1527_vm12 = vcmask 195584   ;;  %vm1529_vm13 = vcmask 261120  }
 0x114   : > { %v645_v9 = vpop.f32.mrb[0].mxu0 }
 0x115   : > { %v649_v10 = vmul.f32 0.35355338, %v645_v9  ;;  %v1723_v11 = vpop.f32.mrb[1].mxu0  ;;  %v1251_v9 = vrot.slane %v1979_v25, 3 }
 0x116   : > { %v801_v11 = vrot.slane %v1991_v29, 5 }
 0x117   : > { %v650_v12 = vsel %vm522_vm10, %v649_v10, -inf }
 0x118   : > { %v652_v13 = vsel %vm479_vm0, %v650_v12, -inf }
 0x119   : > { %653 = vmax.xlane.f32.xlu0 %v652_v13  ;;  %v1252_v13 = vrot.slane %v1981_v26, 2  ;;  %v1238_v26 = vrot.slane %v2010_v41, 2  ;;  %v1240_v41 = vrot.slane %v2014_v44, 1  ;;  %v1014_v44 = vsel %vm538_vm3, %v1013_v56, %v1012_v40 }
 0x11b   : > { %v1253_v53 = vsel %vm532_vm1, %v1252_v13, %v1251_v9  ;;  %v1239_v60 = vsel %vm532_vm1, %v1238_v26, %v1237_v46  ;;  %v1017_v13 = vrot.slane %v2022_v49, 5  ;;  %v1261_v26 = vrot.slane %v1995_v31, 5 }
 0x11c   : > { %v1255_v59 = vsel %vm535_vm2, %v1254_v39, %v1253_v53  ;;  %v1241_v6 = vsel %vm535_vm2, %v1240_v41, %v1239_v60  ;;  %v1019_v39 = vrot.slane %v2024_v50, 4  ;;  %v1021_v53 = vrot.slane %v2027_v52, 3 }
 0x11d   : > { %v1256_v5 = vsel %vm538_vm3, %v1989_v28, %v1255_v59  ;;  %v793_v28 = vrot.slane %v2027_v52, 2  ;;  %v1242_v35 = vsel %vm538_vm3, %v2016_v45, %v1241_v6  ;;  %v1249_v41 = vrot.slane %v2027_v52, 4 }
 0x11e   : > { %v1258_v33 = vsel %vm541_vm4, %v1257_v2, %v1256_v5 }
 0x1a6   : > { %v654_v16 = vpop.xlane.xlu0 %653 }
 0x1a7   : > { %v2076_v17 = vmax.f32 %v2073_v15, %v654_v16  ;;  %v800_v16 = vsel %vm538_vm3, %v799_v0, %v798_v1  ;;  %v1015_v0 = vrot.slane %v2020_v48, 6  ;;  %v1030_v1 = vsel %vm541_vm4, %v1029_v55, %v1028_v27 }
 0x1a8   : > { %v1247_v55 = vrot.slane %v2024_v50, 5 }
 0x1a9   : > { %v656_v19 = vsub.f32 %v2073_v15, %v2076_v17  ;;  %780 = vst.msk [vmem:[#allocation2] sm:$0xff] %vm470_vm9, %v2076_v17  ;;  %661 = vperm.xlu0 %1807, %v2076_v17   ;;  %v1016_v29 = vsel %vm541_vm4, %v1015_v0, %v1014_v44 }
 0x1aa   : > { %v1018_v48 = vsel %vm544_vm5, %v1017_v13, %v1016_v29  ;;  %v2252_v29 = vld [vmem:[#allocation2 + $0x10] sm:$0xff] }
 0x228   : > { %v662_v10 = vpop.permute.xlu0 %661 }
 0x229   : > { %v664_v14 = vsub.f32 %v650_v12, %v662_v10  ;;  %v802_v12 = vsel %vm541_vm4, %v801_v11, %v800_v16  ;;  %v790_v10 = vsel %vm544_vm5, %v789_v58, %v788_v62  ;;  %v1033_v11 = vrot.slane %v1995_v31, 4 }
 0x22a   : > { %v804_v61 = vsel %vm544_vm5, %v803_v47, %v802_v12  ;;  %v1259_v16 = vrot.slane %v1993_v30, 6  ;;  %v792_v38 = vsel %vm547_vm7, %v791_v4, %v790_v10  ;;  %v1245_v12 = vrot.slane %v2022_v49, 6 }
 0x22b   : > { %v665_v25 = vmul.f32 1.442695, %v664_v14  ;;  %v806_v9 = vsel %vm547_vm7, %v805_v57, %v804_v61  ;;  %v1032_v14 = vsel %vm544_vm5, %v1031_v63, %v1030_v1  ;;  %v1244_v47 = vsel %vm541_vm4, %v1243_v21, %v1242_v35  ;;  %v2262_v21 = vld [vmem:[#allocation2 + $0x18] sm:$0xff] }
 0x22c   : > { %v808_v36 = vsel %vm550_vm8, %v807_v3, %v806_v9  ;;  %v1034_v30 = vsel %vm547_vm7, %v1033_v11, %v1032_v14  ;;  %v1260_v45 = vsel %vm544_vm5, %v1259_v16, %v1258_v33  ;;  %v794_v51 = vsel %vm550_vm8, %v793_v28, %v792_v38  ;;  %v2247_v11 = vld [vmem:[#allocation2 + $0x8] sm:$0xff] }
 0x22d   : > { %1809 = vpow2.f32 %v665_v25  ;;  %v1035_v25 = vrot.slane %v1997_v32, 3  ;;  %v1020_v49 = vsel %vm547_vm7, %v1019_v39, %v1018_v48  ;;  %v1262_v56 = vsel %vm547_vm7, %v1261_v26, %v1260_v45 }
 0x22e   : > { %v1246_v27 = vsel %vm544_vm5, %v1245_v12, %v1244_v47  ;;  %v1022_v40 = vsel %vm550_vm8, %v1021_v53, %v1020_v49  ;;  %v1264_v32 = vsel %vm550_vm8, %v1263_v54, %v1262_v56  ;;  %v918_v35 = vrot.slane %v2089_v22, 1 }
 0x22f   : > { %v1036_v31 = vsel %vm550_vm8, %v1035_v25, %v1034_v30  ;;  %v1248_v50 = vsel %vm547_vm7, %v1247_v55, %v1246_v27  ;;  %v920_v38 = vrot.slane %v2086_v20, 7  ;;  %v922_v39 = vrot.slane %v2091_v23, 6 }
 0x230   : > { %v1250_v57 = vsel %vm550_vm8, %v1249_v41, %v1248_v50  ;;  %v919_v25 = vsel %vm532_vm1, %v2079_v18, %v918_v35  ;;  %v924_v26 = vrot.slane %v2094_v34, 5  ;;  %v926_v45 = vrot.slane %v2099_v37, 4 }
 0x231   : > { %v921_v48 = vsel %vm535_vm2, %v920_v38, %v919_v25  ;;  %v1146_v56 = vrot.slane %v2089_v22, 2  ;;  %v1147_v27 = vrot.slane %v2079_v18, 1  ;;  %v1374_v41 = vrot.slane %v2089_v22, 3 }
 0x232   : > { %v923_v12 = vsel %vm538_vm3, %v922_v39, %v921_v48  ;;  %v1150_v50 = vrot.slane %v2091_v23, 7  ;;  %v1386_v39 = vrot.slane %v2105_v43, 4 }
 0x233   : > { %v925_v47 = vsel %vm541_vm4, %v924_v26, %v923_v12 }
 0x234   : > { %v927_v53 = vsel %vm544_vm5, %v926_v45, %v925_v47  ;;  %v657_v45 = vmul.f32 1.442695, %v656_v19 }
 0x237   : > { %v2187_v46 = vpop.eup %1809 }
 0x238   : > { %1727 = vmatmul.mubr.msk.f32.vlgmr.msra.gmra.mrb[0].mxu1 %vm479_vm0, %v2187_v46  ;;  %v669_v55 = vsel %vm479_vm0, %v2187_v46, 0.0 }
 0x239   : > { %1730 = vmatpush3.xpose.msk.msra.mxu1 %vm479_vm0, %v808_v36  ;;  %1731 = vmatprep.mubr.msk.f32.mxu1 %vm1874_vm6, %v1873_v24 }
 0x23a   : > { %1739 = vmatprep.subr.mxu1 %v1873_v24 }
 0x23c   : > { %1732 = vmatmul.mubr.msk.f32.vlgmr.msra.gmra.mrb[2].mxu1 %vm479_vm0, %v794_v51  ;;  %v928_v51 = vrot.slane %v2103_v42, 3 }
 0x23d   : > { %1740 = vmatpush3.xpose.msk.msra.mxu1 %vm479_vm0, %v1036_v31  ;;  %1741 = vmatprep.mubr.msk.f32.mxu1 %vm1874_vm6, %v1873_v24  ;;  %v930_v31 = vrot.slane %v2105_v43, 2 }
 0x23e   : > { %1749 = vmatprep.subr.mxu1 %v1873_v24  ;;  %v929_v49 = vsel %vm547_vm7, %v928_v51, %v927_v53 }
 0x23f   : > { %v931_v54 = vsel %vm550_vm8, %v930_v31, %v929_v49  ;;  %v1131_v49 = vld [vmem:[#allocation3 + $0x10] sm:$0xff] }
 0x240   : > { %1742 = vmatmul.mubr.msk.f32.vlgmr.msra.gmra.mrb[4].mxu1 %vm479_vm0, %v1022_v40  ;;  %1735 = vmatpush3.msra.mxu0 %v931_v54  ;;  %v1148_v40 = vsel %vm532_vm1, %v1147_v27, %v1146_v56  ;;  %v1359_v27 = vld [vmem:[#allocation3 + $0x18] sm:$0xff] }
 0x241   : > { %1750 = vmatpush3.xpose.msk.msra.mxu1 %vm479_vm0, %v1264_v32  ;;  %1751 = vmatprep.mubr.msk.f32.mxu1 %vm1874_vm6, %v1873_v24  ;;  %v1375_v32 = vrot.slane %v2079_v18, 2 }
 0x242   : > { %1744 = vmatprep.subr.mxu0 %v1873_v24 }
 0x243   : > { %v1376_v46 = vsel %vm532_vm1, %v1375_v32, %v1374_v41  ;;  %v675_v41 = vld [vmem:[#allocation4] sm:$0xff] }
 0x244   : > { %1752 = vmatmul.mubr.msk.f32.vlgmr.msra.gmra.mrb[6].mxu1 %vm479_vm0, %v1250_v57  ;;  %v1149_v57 = vsel %vm535_vm2, %v2086_v20, %v1148_v40 }
 0x30b   : > { %v2224_v58 = vpop.f32.mrb[0].mxu1 }
 0x30c   : > { %v1728_v52 = vpop.f32.mrb[1].mxu1 }
 0x30d   : > { %v1377_v52 = vrot.slane %v2086_v20, 1 }
 0x30f   : > { %v879_v59 = vpop.f32.mrb[2].mxu1  ;;  %v1378_v22 = vsel %vm535_vm2, %v1377_v52, %v1376_v46 }
 0x310   : > { %v883_v60 = vmul.f32 0.35355338, %v879_v59  ;;  %v1733_v61 = vpop.f32.mrb[3].mxu1 }
 0x311   : > { %v1152_v61 = vrot.slane %v2094_v34, 6 }
 0x312   : > { %v2229_v62 = vsel %vm522_vm10, %v883_v60, -inf }
 0x313   : > { %v1107_v63 = vpop.f32.mrb[4].mxu1  ;;  %v887_v0 = vsel %vm479_vm0, %v2229_v62, -inf }
 0x314   : > { %v1111_v1 = vmul.f32 0.35355338, %v1107_v63  ;;  %888 = vmax.xlane.f32.xlu1 %v887_v0  ;;  %v1743_v44 = vpop.f32.mrb[5].mxu1  ;;  %v1151_v63 = vsel %vm538_vm3, %v1150_v50, %v1149_v57 }
 0x315   : > { %v1153_v20 = vsel %vm541_vm4, %v1152_v61, %v1151_v63 }
 0x316   : > { %v2236_v2 = vsel %vm522_vm10, %v1111_v1, -inf  ;;  %v1154_v1 = vrot.slane %v2099_v37, 5 }
 0x317   : > { %v1335_v3 = vpop.f32.mrb[6].mxu1  ;;  %v1115_v4 = vsel %vm479_vm0, %v2236_v2, -inf }
 0x318   : > { %v1339_v5 = vmul.f32 0.35355338, %v1335_v3  ;;  %1116 = vmax.xlane.f32.xlu1 %v1115_v4  ;;  %v1753_v6 = vpop.f32.mrb[7].mxu1  ;;  %v1380_v3 = vrot.slane %v2094_v34, 7 }
 0x31a   : > { %v2243_v9 = vsel %vm522_vm10, %v1339_v5, -inf  ;;  %v1156_v5 = vrot.slane %v2103_v42, 4 }
 0x31b   : > { %v1343_v10 = vsel %vm479_vm0, %v2243_v9, -inf }
 0x31c   : > { %1344 = vmax.xlane.f32.xlu1 %v1343_v10  ;;  %v1155_v10 = vsel %vm544_vm5, %v1154_v1, %v1153_v20  ;;  %v911_v1 = vld [vmem:[#allocation4 + $0x8] sm:$0xff] }
 0x31d   : > { %v1157_v34 = vsel %vm547_vm7, %v1156_v5, %v1155_v10  ;;  %v1367_v10 = vld [vmem:[#allocation4 + $0x18] sm:$0xff] }
 0x3a1   : > { %v889_v13 = vpop.xlane.xlu1 %888 }
 0x3a2   : > { %v2250_v14 = vmax.f32 %v2247_v11, %v889_v13  ;;  %v1382_v13 = vrot.slane %v2099_v37, 6 }
 0x3a4   : > { %v891_v16 = vsub.f32 %v2247_v11, %v2250_v14  ;;  %1008 = vst.msk [vmem:[#allocation2 + $0x8] sm:$0xff] %vm470_vm9, %v2250_v14  ;;  %896 = vperm.xlu1 %1808, %v2250_v14   ;;  %v667_v14 = vld [vmem:[#allocation3] sm:$0xff] }
 0x3a5   : > { %v1117_v7 = vpop.xlane.xlu1 %1116 }
 0x3a6   : > { %v2260_v8 = vmax.f32 %v2252_v29, %v1117_v7  ;;  %v892_v51 = vmul.f32 1.442695, %v891_v16 }
 0x3a8   : > { %v1119_v28 = vsub.f32 %v2252_v29, %v2260_v8  ;;  %1236 = vst.msk [vmem:[#allocation2 + $0x10] sm:$0xff] %vm470_vm9, %v2260_v8  ;;  %1124 = vperm.xlu1 %1808, %v2260_v8  }
 0x3a9   : > { %v1345_v33 = vpop.xlane.xlu1 %1344 }
 0x3aa   : > { %v2271_v36 = vmax.f32 %v2262_v21, %v1345_v33  ;;  %v1158_v33 = vrot.slane %v2105_v43, 3  ;;  %v1120_v53 = vmul.f32 1.442695, %v1119_v28  ;;  %v903_v28 = vld [vmem:[#allocation3 + $0x8] sm:$0xff] }
 0x3ac   : > { %v1347_v30 = vsub.f32 %v2262_v21, %v2271_v36  ;;  %1464 = vst.msk [vmem:[#allocation2 + $0x18] sm:$0xff] %vm470_vm9, %v2271_v36  ;;  %1352 = vperm.xlu1 %1808, %v2271_v36   ;;  %v1159_v25 = vsel %vm550_vm8, %v1158_v33, %v1157_v34 }
 0x3d0   : > { %670 = vadd.xlane.f32.xlu1 %v669_v55 }
 0x423   : > { %v897_v59 = vpop.permute.xlu1 %896 }
 0x424   : > { %v899_v60 = vsub.f32 %v2229_v62, %v897_v59  ;;  %v1379_v62 = vsel %vm538_vm3, %v2091_v23, %v1378_v22  ;;  %v1384_v23 = vrot.slane %v2103_v42, 5 }
 0x426   : > { %v900_v0 = vmul.f32 1.442695, %v899_v60 }
 0x427   : > { %v1125_v18 = vpop.permute.xlu1 %1124 }
 0x428   : > { %1811 = vpow2.f32 %v900_v0  ;;  %v1127_v44 = vsub.f32 %v2236_v2, %v1125_v18  ;;  %v1381_v2 = vsel %vm541_vm4, %v1380_v3, %v1379_v62  ;;  %v1139_v3 = vld [vmem:[#allocation4 + $0x10] sm:$0xff] }
 0x429   : > { %v1383_v38 = vsel %vm544_vm5, %v1382_v13, %v1381_v2 }
 0x42a   : > { %v1128_v4 = vmul.f32 1.442695, %v1127_v44  ;;  %v1385_v48 = vsel %vm547_vm7, %v1384_v23, %v1383_v38 }
 0x42b   : > { %v1353_v6 = vpop.permute.xlu1 %1352  ;;  %v1387_v42 = vsel %vm550_vm8, %v1386_v39, %v1385_v48 }
 0x42c   : > { %1813 = vpow2.f32 %v1128_v4  ;;  %v1355_v7 = vsub.f32 %v2243_v9, %v1353_v6 }
 0x42e   : > { %v1356_v35 = vmul.f32 1.442695, %v1355_v7 }
 0x430   : > { %1815 = vpow2.f32 %v1356_v35 }
 0x431   : > { %1817 = vpow2.f32 %v657_v45 }
 0x432   : > { %v1812_v37 = vpop.eup %1811  ;;  %1819 = vpow2.f32 %v892_v51 }
 0x433   : > { %1737 = vmatmul.mubr.msk.f32.vlgmr.msra.gmra.mrb[2].mxu0 %vm479_vm0, %v1812_v37  ;;  %v905_v9 = vsel %vm479_vm0, %v1812_v37, 0.0  ;;  %1821 = vpow2.f32 %v1120_v53 }
 0x434   : > { %906 = vadd.xlane.f32.xlu0 %v905_v9  ;;  %1745 = vmatpush3.msra.mxu0 %v1159_v25 }
 0x435   : > { %1746 = vmatprep.mubr.msk.f32.mxu0 %vm1874_vm6, %v1873_v24  ;;  %1754 = vmatprep.subr.mxu0 %v1873_v24 }
 0x436   : > { %v1814_v26 = vpop.eup %1813 }
 0x437   : > { %1747 = vmatmul.mubr.msk.f32.vlgmr.msra.gmra.mrb[4].mxu0 %vm479_vm0, %v1814_v26  ;;  %v1133_v43 = vsel %vm479_vm0, %v1814_v26, 0.0 }
 0x438   : > { %1134 = vadd.xlane.f32.xlu1 %v1133_v43  ;;  %1755 = vmatpush3.msra.mxu0 %v1387_v42 }
 0x439   : > { %1756 = vmatprep.mubr.msk.f32.mxu0 %vm1874_vm6, %v1873_v24  ;;  %v1348_v24 = vmul.f32 1.442695, %v1347_v30 }
 0x43a   : > { %v1816_v12 = vpop.eup %1815 }
 0x43b   : > { %1757 = vmatmul.mubr.msk.f32.vlgmr.msra.gmra.mrb[6].mxu0 %vm479_vm0, %v1816_v12  ;;  %v1361_v47 = vsel %vm479_vm0, %v1816_v12, 0.0  ;;  %1823 = vpow2.f32 %v1348_v24  ;;  %v1818_v15 = vpop.eup %1817 }
 0x43c   : > { %1362 = vadd.xlane.f32.xlu1 %v1361_v47  ;;  %v1820_v17 = vpop.eup %1819  ;;  %v668_v16 = vmul.f32 %v1818_v15, %v667_v14 }
 0x43d   : > { %v1822_v19 = vpop.eup %1821  ;;  %v904_v36 = vmul.f32 %v1820_v17, %v903_v28 }
 0x43e   : > { %v1132_v55 = vmul.f32 %v1822_v19, %v1131_v49 }
 0x445   : > { %v1824_v11 = vpop.eup %1823 }
 0x446   : > { %v1360_v32 = vmul.f32 %v1824_v11, %v1359_v27 }
 0x44a   : > { %678 = vperm.xlu0 %1807, %v1818_v15  }
 0x44d   : > { %914 = vperm.xlu1 %1808, %v1820_v17  }
 0x44e   : > { %1142 = vperm.xlu0 %1807, %v1822_v19  }
 0x451   : > { %1370 = vperm.xlu1 %1808, %v1824_v11  }
 0x45d   : > { %v671_v31 = vpop.xlane.xlu1 %670 }
 0x45e   : > { %v672_v29 = vadd.f32 %v671_v31, %v668_v16 }
 0x460   : > { %674 = vst.msk [vmem:[#allocation3] sm:$0xff] %vm470_vm9, %v672_v29 }
 0x467   : > { %v1469_v8 = vld [vmem:[#allocation3] sm:$0xff] }
 0x468   : > { %1825 = vrcp.f32 %v1469_v8 }
 0x472   : > { %v1826_v21 = vpop.eup %1825 }
 0x473   : > { %1474 = vperm.xlu1 %1808, %v1826_v21  }
 0x4c1   : > { %v907_v30 = vpop.xlane.xlu0 %906 }
 0x4c2   : > { %v908_v54 = vadd.f32 %v907_v30, %v904_v36 }
 0x4c4   : > { %909 = vst.msk [vmem:[#allocation3 + $0x8] sm:$0xff] %vm470_vm9, %v908_v54 }
 0x4c5   : > { %v1135_v56 = vpop.xlane.xlu1 %1134 }
 0x4c6   : > { %v1136_v40 = vadd.f32 %v1135_v56, %v1132_v55 }
 0x4c8   : > { %1137 = vst.msk [vmem:[#allocation3 + $0x10] sm:$0xff] %vm470_vm9, %v1136_v40 }
 0x4c9   : > { %v1363_v50 = vpop.xlane.xlu1 %1362  ;;  %v679_v57 = vpop.permute.xlu0 %678 }
 0x4ca   : > { %v1364_v52 = vadd.f32 %v1363_v50, %v1360_v32  ;;  %v681_v59 = vmul.f32 %v679_v57, %v675_v41 }
 0x4cb   : > { %v1479_v46 = vld [vmem:[#allocation3 + $0x8] sm:$0xff] }
 0x4cc   : > { %1365 = vst.msk [vmem:[#allocation3 + $0x18] sm:$0xff] %vm470_vm9, %v1364_v52  ;;  %v778_v60 = vadd.f32 %v2224_v58, %v681_v59  ;;  %1827 = vrcp.f32 %v1479_v46 }
 0x4cd   : > { %v915_v44 = vpop.permute.xlu1 %914  ;;  %v1143_v62 = vpop.permute.xlu0 %1142 }
 0x4ce   : > { %779 = vst.msk [vmem:[#allocation4] sm:$0xff] %vm479_vm0, %v778_v60  ;;  %v917_v20 = vmul.f32 %v915_v44, %v911_v1  ;;  %v1145_v6 = vmul.f32 %v1143_v62, %v1139_v3 }
 0x4cf   : > { %v1490_v61 = vld [vmem:[#allocation3 + $0x10] sm:$0xff] }
 0x4d0   : > { %1829 = vrcp.f32 %v1490_v61 }
 0x4d1   : > { %v1371_v13 = vpop.permute.xlu1 %1370 }
 0x4d2   : > { %v1373_v35 = vmul.f32 %v1371_v13, %v1367_v10 }
 0x4d3   : > { %v1501_v63 = vld [vmem:[#allocation3 + $0x18] sm:$0xff] }
 0x4d4   : > { %1831 = vrcp.f32 %v1501_v63 }
 0x4d5   : > { %v1471_v47 = vld [vmem:[#allocation4] sm:$0xff] }
 0x4d6   : > { %v1828_v0 = vpop.eup %1827 }
 0x4d7   : > { %1485 = vperm.xlu0 %1807, %v1828_v0  }
 0x4da   : > { %v1830_v22 = vpop.eup %1829 }
 0x4db   : > { %1496 = vperm.xlu1 %1808, %v1830_v22  }
 0x4de   : > { %v1832_v18 = vpop.eup %1831 }
 0x4df   : > { %1507 = vperm.xlu0 %1807, %v1832_v18  }
 0x4f2   : > { %v1475_v25 = vpop.permute.xlu1 %1474 }
 0x4f3   : > { %v1477_v53 = vmul.f32 %v1475_v25, %v1471_v47 }
 0x506   : > { %v1002_v4 = vpop.f32.mrb[2].mxu0 }
 0x507   : > { %v1006_v58 = vadd.f32 %v1002_v4, %v917_v20  ;;  %v1738_v5 = vpop.f32.mrb[3].mxu0 }
 0x509   : > { %1007 = vst.msk [vmem:[#allocation4 + $0x8] sm:$0xff] %vm479_vm0, %v1006_v58 }
 0x50a   : > { %v1230_v7 = vpop.f32.mrb[4].mxu0 }
 0x50b   : > { %v1234_v2 = vadd.f32 %v1230_v7, %v1145_v6  ;;  %v1748_v33 = vpop.f32.mrb[5].mxu0 }
 0x50d   : > { %1235 = vst.msk [vmem:[#allocation4 + $0x10] sm:$0xff] %vm479_vm0, %v1234_v2 }
 0x50e   : > { %v1458_v34 = vpop.f32.mrb[6].mxu0 }
 0x50f   : > { %v1462_v23 = vadd.f32 %v1458_v34, %v1373_v35  ;;  %v1758_v38 = vpop.f32.mrb[7].mxu0 }
 0x510   : > { %v1482_v37 = vld [vmem:[#allocation4 + $0x8] sm:$0xff] }
 0x511   : > { %1463 = vst.msk [vmem:[#allocation4 + $0x18] sm:$0xff] %vm479_vm0, %v1462_v23 }
 0x514   : > { %v1493_v42 = vld [vmem:[#allocation4 + $0x10] sm:$0xff] }
 0x518   : > { %v1504_v12 = vld [vmem:[#allocation4 + $0x18] sm:$0xff] }
 0x556   : > { %v1486_v39 = vpop.permute.xlu0 %1485 }
 0x557   : > { %v1488_v48 = vmul.f32 %v1486_v39, %v1482_v37 }
 0x559   : > { %1512 = vrot.lane.b32.xlu1 %v1488_v48, %s1877_s27 }
 0x55a   : > { %v1497_v9 = vpop.permute.xlu1 %1496 }
 0x55b   : > { %v1499_v26 = vmul.f32 %v1497_v9, %v1493_v42 }
 0x55d   : > { %1516 = vrot.lane.b32.xlu0 %v1499_v26, %s1878_s28 }
 0x55e   : > { %v1508_v43 = vpop.permute.xlu0 %1507 }
 0x55f   : > { %v1510_v45 = vmul.f32 %v1508_v43, %v1504_v12 }
 0x561   : > { %1520 = vrot.lane.b32.xlu1 %v1510_v45, %s1879_s29 }
 0x5cb   : > { %v1513_v51 = vpop.permute.xlu1 %1512 }
 0x5cc   : > { %v1524_v15 = vsel %vm479_vm0, %v1477_v53, %v1513_v51 }
 0x5cf   : > { %v1517_v24 = vpop.permute.xlu0 %1516 }
 0x5d0   : > { %v1526_v17 = vsel %vm1525_vm11, %v1524_v15, %v1517_v24 }
 0x5d3   : > { %v1521_v19 = vpop.permute.xlu1 %1520 }
 0x5d4   : > { %v1528_v11 = vsel %vm1527_vm12, %v1526_v17, %v1521_v19 }
 0x5d5   : > { %1530 = vst.msk [vmem:[%s465_s6] sm:$0xff] %vm1529_vm13, %v1528_v11 }
 0x5d6 PF: > { %s13_s16 = sadd.s32 1, %s1871_s16   ;;  %s2386_s12 = smov %s1859_s13 }
 0x5d7   : > { %p10_p10 = scmp.ge.s32.totalorder %s13_s16, 4   ;;  %s2387_s13 = smov %s1939_s21 }
 0x5d8   : > { %s2388_s14 = smov %s1867_s15  ;;  %s2389_s15 = smov %s2391_s17 }
 0x5d9   :  { %12 = sbr.rel (!%p10_p10) target bundleno = 3 (0x3), region = 233 }

</bundles_post_ra>
